<compile_context>
chip_gen: v7x
topology: tpu7x:2x2x1
jax: 0.10.0
libtpu: 0.0.40
codegen_flags: <defaults>
</compile_context>

<pallas_src>
import functools

import jax
import jax.numpy as jnp
from jax import lax
from jax.experimental import pallas as pl
from jax.experimental.pallas import tpu as pltpu


# ----------------------------------------------------------------------------
# helpers
# ----------------------------------------------------------------------------

def _round_up(x, m):
    return ((x + m - 1) // m) * m


def _pad_to(x, shape):
    return jnp.pad(x, [(0, t - s) for s, t in zip(x.shape, shape)])


def _pack_gates(w, H, Hp):
    """Repack (..., 4*H) gate-packed (i,f,g,o) columns so each gate starts at a
    lane-aligned multiple of Hp (zero padded)."""
    lead = w.shape[:-1]
    out = jnp.zeros(lead + (4 * Hp,), w.dtype)
    for g in range(4):
        out = out.at[..., g * Hp:g * Hp + H].set(w[..., g * H:(g + 1) * H])
    return out


# ----------------------------------------------------------------------------
# Pallas kernels
# ----------------------------------------------------------------------------

def _encoder_kernel(x_ref, a_ref, wih_ref, whh_ref, b_ref,
                    ctxw_ref, ctxb_ref, cbw_ref, cbb_ref,
                    hbws_ref, hbwa_ref, hbb_ref,
                    ctx_ref, h0_ref, c0_ref):
    """Whole-sequence LSTM encoder + fused ctx/c/h bridges (single invocation)."""
    S, Bp, _ = x_ref.shape
    Hsp = whh_ref.shape[0]

    # hoist loop-invariant broadcasts (JAX does not CSE broadcast_in_dim)
    b_g = jnp.broadcast_to(b_ref[...], (Bp, 4 * Hsp))
    ctx_b = jnp.broadcast_to(ctxb_ref[...], (Bp, ctxw_ref.shape[1]))

    def step(t, carry):
        h, c = carry
        x_t = x_ref[t]                                                    # (Bp, Ep)
        gates = (jnp.dot(x_t, wih_ref[...], preferred_element_type=jnp.float32)
                 + jnp.dot(h, whh_ref[...], preferred_element_type=jnp.float32)
                 + b_g)                                                   # (Bp, 4*Hsp)
        # PyTorch LSTM gate order i,f,g,o; slices are 128-lane aligned (Hsp % 128 == 0)
        i = jax.nn.sigmoid(gates[:, 0 * Hsp:1 * Hsp])
        f = jax.nn.sigmoid(gates[:, 1 * Hsp:2 * Hsp])
        g = jnp.tanh(gates[:, 2 * Hsp:3 * Hsp])
        o = jax.nn.sigmoid(gates[:, 3 * Hsp:4 * Hsp])
        c_new = f * c + i * g
        h_new = o * jnp.tanh(c_new)
        # fused ctx bridge -> lane-dense (Bp, Htp) tile store, time-major
        ctx_ref[t] = (jnp.dot(h_new, ctxw_ref[...],
                              preferred_element_type=jnp.float32) + ctx_b)
        return h_new, c_new

    h_init = jnp.zeros((Bp, Hsp), jnp.float32)
    h_T, c_T = lax.fori_loop(0, S, step, (h_init, h_init))

    # fused bridges for the decoder initial state
    c0_ref[...] = (jnp.dot(c_T, cbw_ref[...], preferred_element_type=jnp.float32)
                   + cbb_ref[...])
    h0_ref[...] = (jnp.dot(h_T, hbws_ref[...], preferred_element_type=jnp.float32)
                   + jnp.dot(a_ref[...], hbwa_ref[...], preferred_element_type=jnp.float32)
                   + hbb_ref[...])


def _decoder_kernel(y_ref, h0_ref, c0_ref, ctx_ref, bias_ref,
                    wih_ref, whh_ref, b_ref, wc_ref, wh_ref, batt_ref,
                    out_ref):
    """Whole-sequence attention-LSTM decoder (single invocation)."""
    St, Bp, _ = y_ref.shape
    Htp = whh_ref.shape[0]

    ctx = ctx_ref[...]                          # (Bp, Ss, Htp), loop invariant
    bias3 = bias_ref[...][:, None, :]           # (Bp, 1, Ss) additive pad mask
    b_g = jnp.broadcast_to(b_ref[...], (Bp, 4 * Htp))
    batt = jnp.broadcast_to(batt_ref[...], (Bp, Htp))

    def step(t, carry):
        h, c = carry
        y_t = y_ref[t]
        gates = (jnp.dot(y_t, wih_ref[...], preferred_element_type=jnp.float32)
                 + jnp.dot(h, whh_ref[...], preferred_element_type=jnp.float32)
                 + b_g)
        i = jax.nn.sigmoid(gates[:, 0 * Htp:1 * Htp])
        f = jax.nn.sigmoid(gates[:, 1 * Htp:2 * Htp])
        g = jnp.tanh(gates[:, 2 * Htp:3 * Htp])
        o = jax.nn.sigmoid(gates[:, 3 * Htp:4 * Htp])
        c_new = f * c + i * g
        h_new = o * jnp.tanh(c_new)

        # dot-product attention (batched einsum, q-dim = 1) with additive pad bias
        q3 = h_new[:, None, :]                                            # (Bp,1,Htp)
        scores = jnp.einsum('bqh,bsh->bqs', q3, ctx,
                            preferred_element_type=jnp.float32) + bias3   # (Bp,1,Ss)
        m = jnp.max(scores, axis=-1, keepdims=True)
        p = jnp.exp(scores - m)
        attn = p * pl.reciprocal(jnp.sum(p, axis=-1, keepdims=True), approx=True)
        context = jnp.einsum('bqs,bsh->bqh', attn, ctx,
                             preferred_element_type=jnp.float32)[:, 0, :]  # (Bp,Htp)

        # output combiner: tanh(W1*ctx + W2*h + b) (concat replaced by split matmuls)
        out_t = jnp.tanh(
            jnp.dot(context, wc_ref[...], preferred_element_type=jnp.float32)
            + jnp.dot(h_new, wh_ref[...], preferred_element_type=jnp.float32)
            + batt)
        out_ref[t] = out_t                       # lane-dense full-tile store
        return h_new, c_new

    lax.fori_loop(0, St, step, (h0_ref[...], c0_ref[...]))


def _proj_softmax_kernel(x_ref, w_ref, b_ref, logit_ref, prob_ref):
    """Row-tiled output projection + softmax over the (padded) vocab.  Padded vocab
    columns have bias -1e9 so they carry zero probability mass."""
    logits = (jnp.dot(x_ref[...], w_ref[...], preferred_element_type=jnp.float32)
              + b_ref[...])
    logit_ref[...] = logits
    m = jnp.max(logits, axis=-1, keepdims=True)
    p = jnp.exp(logits - m)
    prob_ref[...] = p / jnp.sum(p, axis=-1, keepdims=True)


# ----------------------------------------------------------------------------
# Parameters (deterministic uniform(-0.1, 0.1) like init_weights) + TPU padding
# ----------------------------------------------------------------------------

def init_params(key, src_vocab, tgt_vocab, emb_dim, h_src, h_tgt):
    initrange = 0.1

    def u(k, shape):
        return jax.random.uniform(k, shape, jnp.float32, -initrange, initrange)

    keys = iter(jax.random.split(key, 24))
    p = {
        "src_embedding": u(next(keys), (src_vocab, emb_dim)),
        "tgt_embedding": u(next(keys), (tgt_vocab, emb_dim)),
        "attr_embedding": u(next(keys), (2, emb_dim)),              # model_type == 'delete'
        # encoder LSTM (single layer, unidirectional); W stored (in, 4H), bias = b_ih + b_hh
        "enc_wih": u(next(keys), (emb_dim, 4 * h_src)),
        "enc_whh": u(next(keys), (h_src, 4 * h_src)),
        "enc_b": u(next(keys), (1, 4 * h_src)) + u(next(keys), (1, 4 * h_src)),
        # bridges (h_bridge stored split: rows for h_t and rows for attribute emb)
        "ctx_w": u(next(keys), (h_src, h_tgt)), "ctx_b": u(next(keys), (1, h_tgt)),
        "c_bridge_w": u(next(keys), (h_src, h_tgt)), "c_bridge_b": u(next(keys), (1, h_tgt)),
        "hb_w_src": u(next(keys), (h_src, h_tgt)),
        "hb_w_attr": u(next(keys), (emb_dim, h_tgt)),
        "hb_b": u(next(keys), (1, h_tgt)),
        # decoder attention LSTM (watt stored split: context half / hidden half)
        "dec_wih": u(next(keys), (emb_dim, 4 * h_tgt)),
        "dec_whh": u(next(keys), (h_tgt, 4 * h_tgt)),
        "dec_b": u(next(keys), (1, 4 * h_tgt)) + u(next(keys), (1, 4 * h_tgt)),
        "dec_watt_ctx": u(next(keys), (h_tgt, h_tgt)),
        "dec_watt_h": u(next(keys), (h_tgt, h_tgt)),
        "dec_batt": u(next(keys), (1, h_tgt)),
        # output projection
        "out_w": u(next(keys), (h_tgt, tgt_vocab)),
        "out_b": u(next(keys), (1, tgt_vocab)),
    }
    return p


def pad_params(p, emb_dim, h_src, h_tgt, tgt_vocab):
    """Pad lane dims to multiples of 128 and repack LSTM gate blocks lane-aligned.
    Padded hidden lanes stay exactly zero through the recurrences (zero weight
    rows/cols + zero bias), so real-lane values are bit-identical to unpadded."""
    Ep = _round_up(emb_dim, 128)
    Hsp = _round_up(h_src, 128)
    Htp = _round_up(h_tgt, 128)
    Vp = _round_up(tgt_vocab, 128)
    q = {
        "src_embedding": _pad_to(p["src_embedding"], (p["src_embedding"].shape[0], Ep)),
        "tgt_embedding": _pad_to(p["tgt_embedding"], (p["tgt_embedding"].shape[0], Ep)),
        "attr_embedding": _pad_to(p["attr_embedding"], (2, Ep)),
        "enc_wih": _pad_to(_pack_gates(p["enc_wih"], h_src, Hsp), (Ep, 4 * Hsp)),
        "enc_whh": _pad_to(_pack_gates(p["enc_whh"], h_src, Hsp), (Hsp, 4 * Hsp)),
        "enc_b": _pack_gates(p["enc_b"], h_src, Hsp),
        "ctx_w": _pad_to(p["ctx_w"], (Hsp, Htp)),
        "ctx_b": _pad_to(p["ctx_b"], (1, Htp)),
        "c_bridge_w": _pad_to(p["c_bridge_w"], (Hsp, Htp)),
        "c_bridge_b": _pad_to(p["c_bridge_b"], (1, Htp)),
        "hb_w_src": _pad_to(p["hb_w_src"], (Hsp, Htp)),
        "hb_w_attr": _pad_to(p["hb_w_attr"], (Ep, Htp)),
        "hb_b": _pad_to(p["hb_b"], (1, Htp)),
        "dec_wih": _pad_to(_pack_gates(p["dec_wih"], h_tgt, Htp), (Ep, 4 * Htp)),
        "dec_whh": _pad_to(_pack_gates(p["dec_whh"], h_tgt, Htp), (Htp, 4 * Htp)),
        "dec_b": _pack_gates(p["dec_b"], h_tgt, Htp),
        "dec_watt_ctx": _pad_to(p["dec_watt_ctx"], (Htp, Htp)),
        "dec_watt_h": _pad_to(p["dec_watt_h"], (Htp, Htp)),
        "dec_batt": _pad_to(p["dec_batt"], (1, Htp)),
        "out_w": _pad_to(p["out_w"], (Htp, Vp)),
        # padded vocab columns get -1e9 bias -> exp underflows to exactly 0
        "out_b": jnp.full((1, Vp), -1e9, jnp.float32).at[:, :tgt_vocab].set(p["out_b"][0]),
    }
    return q


# ----------------------------------------------------------------------------
# SeqModel.forward
# ----------------------------------------------------------------------------

@functools.partial(jax.jit, static_argnames=("tgt_vocab",))
def seq_model_forward(params, input_src, input_tgt, srcmask, srclens,
                      input_attr, attrlens, attrmask, side_info, *, tgt_vocab):
    del srclens, attrlens, attrmask, side_info  # unused: model_type='delete', predict_sides=False

    B, Ss = input_src.shape
    St = input_tgt.shape[1]
    Bp = _round_up(B, 8)                         # fill all 8 sublanes of every vreg

    src_ids = jnp.pad(input_src, ((0, Bp - B), (0, 0)))
    tgt_ids = jnp.pad(input_tgt, ((0, Bp - B), (0, 0)))
    attr_ids = jnp.pad(input_attr, (0, Bp - B))
    mask = jnp.pad(srcmask.astype(jnp.float32), ((0, Bp - B), (0, 0)), constant_values=1.0)

    # embeddings gathered directly time-major (only the tiny int id matrix is transposed)
    x_tm = params["src_embedding"][src_ids.T]            # (Ss, Bp, Ep)
    y_tm = params["tgt_embedding"][tgt_ids.T]            # (St, Bp, Ep)
    a_emb = params["attr_embedding"][attr_ids]           # (Bp, Ep)

    # PyTorch: srcmask = (1 - srcmask).byte(); here precomputed as an additive bias
    attn_bias = (1.0 - mask) * (-1e9)                     # (Bp, Ss)

    Htp = params["ctx_w"].shape[1]

    # encoder LSTM + fused ctx/c/h bridges, one pallas_call (time loop in-kernel)
    ctx_tm, h0, c0 = pl.pallas_call(
        _encoder_kernel,
        out_shape=(jax.ShapeDtypeStruct((Ss, Bp, Htp), jnp.float32),
                   jax.ShapeDtypeStruct((Bp, Htp), jnp.float32),
                   jax.ShapeDtypeStruct((Bp, Htp), jnp.float32)),
    )(x_tm, a_emb,
      params["enc_wih"], params["enc_whh"], params["enc_b"],
      params["ctx_w"], params["ctx_b"],
      params["c_bridge_w"], params["c_bridge_b"],
      params["hb_w_src"], params["hb_w_attr"], params["hb_b"])

    # batch-major ctx for the decoder attention (tiny one-time XLA transpose on HBM;
    # keeps every in-kernel recurrent store a full (8,128) tile)
    ctx_bsd = jnp.transpose(ctx_tm, (1, 0, 2))            # (Bp, Ss, Htp)

    # attention-LSTM decoder, one pallas_call (time loop in-kernel)
    tgt_out_tm = pl.pallas_call(
        _decoder_kernel,
        out_shape=jax.ShapeDtypeStruct((St, Bp, Htp), jnp.float32),
    )(y_tm, h0, c0, ctx_bsd, attn_bias,
      params["dec_wih"], params["dec_whh"], params["dec_b"],
      params["dec_watt_ctx"], params["dec_watt_h"], params["dec_batt"])

    # output projection + softmax (flattened like .view(B*S, H)), row-tiled & pipelined
    tgt_out = jnp.transpose(tgt_out_tm, (1, 0, 2)).reshape(Bp * St, Htp)
    Vp = params["out_w"].shape[1]
    N = Bp * St
    TM = min(N, 256)                                      # rows per grid step (N % 8 == 0)
    logits_p, probs_p = pl.pallas_call(
        _proj_softmax_kernel,
        grid=(pl.cdiv(N, TM),),
        in_specs=[pl.BlockSpec((TM, Htp), lambda i: (i, 0)),
                  pl.BlockSpec((Htp, Vp), lambda i: (0, 0)),
                  pl.BlockSpec((1, Vp), lambda i: (0, 0))],
        out_specs=(pl.BlockSpec((TM, Vp), lambda i: (i, 0)),
                   pl.BlockSpec((TM, Vp), lambda i: (i, 0))),
        out_shape=(jax.ShapeDtypeStruct((N, Vp), jnp.float32),
                   jax.ShapeDtypeStruct((N, Vp), jnp.float32)),
        compiler_params=pltpu.CompilerParams(
            dimension_semantics=("parallel",)),
    )(tgt_out, params["out_w"], params["out_b"])

    decoder_logit = logits_p.reshape(Bp, St, Vp)[:B, :, :tgt_vocab]
    probs = probs_p.reshape(Bp, St, Vp)[:B, :, :tgt_vocab]

    side_logit, side_loss = None, 0.0                     # predict_sides == False
    return decoder_logit, probs, side_logit, side_loss


# ----------------------------------------------------------------------------
# Driver
# ----------------------------------------------------------------------------

if __name__ == "__main__":
    B, S_SRC, S_TGT = 2, 8, 8
    EMB, H_SRC, H_TGT = 32, 32, 32
    SRC_VOCAB, TGT_VOCAB = 50, 60
    PAD_ID = 0

    key = jax.random.PRNGKey(0)
    kp, k1, k2, k3 = jax.random.split(key, 4)

    raw_params = init_params(kp, SRC_VOCAB, TGT_VOCAB, EMB, H_SRC, H_TGT)
    params = pad_params(raw_params, EMB, H_SRC, H_TGT, TGT_VOCAB)

    input_src = jax.random.randint(k1, (B, S_SRC), 1, SRC_VOCAB, dtype=jnp.int32)
    input_tgt = jax.random.randint(k2, (B, S_TGT), 1, TGT_VOCAB, dtype=jnp.int32)
    # srcmask: 1 at valid tokens, 0 at padding (forward flips it into an additive bias)
    srclens = jnp.array([S_SRC, S_SRC - 2], dtype=jnp.int32)
    srcmask = (jnp.arange(S_SRC)[None, :] < srclens[:, None]).astype(jnp.int32)
    input_src = jnp.where(srcmask > 0, input_src, PAD_ID)
    input_attr = jax.random.randint(k3, (B,), 0, 2, dtype=jnp.int32)
    attrlens = jnp.ones((B,), dtype=jnp.int32)
    attrmask = jnp.zeros((B, S_SRC), dtype=jnp.int32)
    side_info = jnp.zeros((B, 2), dtype=jnp.int32)

    decoder_logit, probs, side_logit, side_loss = seq_model_forward(
        params, input_src, input_tgt, srcmask, srclens,
        input_attr, attrlens, attrmask, side_info, tgt_vocab=TGT_VOCAB)

    jax.block_until_ready((decoder_logit, probs))
    assert decoder_logit.shape == (B, S_TGT, TGT_VOCAB)
    assert probs.shape == (B, S_TGT, TGT_VOCAB)
    assert bool(jnp.isfinite(decoder_logit).all())
    assert abs(float(probs[0, 0].sum()) - 1.0) < 1e-3
    print("KERNEL_OK")
</pallas_src>

<mosaic_0001>
module attributes {stable_mosaic.version = 11 : i64} {
  func.func @_encoder_kernel(%arg0: memref<8x8x128xf32, #tpu.memory_space<vmem>>, %arg1: memref<8x128xf32, #tpu.memory_space<vmem>>, %arg2: memref<128x512xf32, #tpu.memory_space<vmem>>, %arg3: memref<128x512xf32, #tpu.memory_space<vmem>>, %arg4: memref<1x512xf32, #tpu.memory_space<vmem>>, %arg5: memref<128x128xf32, #tpu.memory_space<vmem>>, %arg6: memref<1x128xf32, #tpu.memory_space<vmem>>, %arg7: memref<128x128xf32, #tpu.memory_space<vmem>>, %arg8: memref<1x128xf32, #tpu.memory_space<vmem>>, %arg9: memref<128x128xf32, #tpu.memory_space<vmem>>, %arg10: memref<128x128xf32, #tpu.memory_space<vmem>>, %arg11: memref<1x128xf32, #tpu.memory_space<vmem>>, %arg12: memref<8x8x128xf32, #tpu.memory_space<vmem>>, %arg13: memref<8x128xf32, #tpu.memory_space<vmem>>, %arg14: memref<8x128xf32, #tpu.memory_space<vmem>>) attributes {dimension_semantics = [], scalar_prefetch = 0 : i64, scratch_operands = 0 : i64, tpu.core_type = #tpu.core_type<tc>} {
    %c0 = arith.constant 0 : index
    %c0_0 = arith.constant 0 : index
    %0 = vector.load %arg4[%c0, %c0_0] : memref<1x512xf32, #tpu.memory_space<vmem>>, vector<1x512xf32>
    %1 = vector.shape_cast %0 : vector<1x512xf32> to vector<1x512xf32>
    %2 = vector.broadcast %1 : vector<1x512xf32> to vector<8x512xf32>
    %c0_1 = arith.constant 0 : index
    %c0_2 = arith.constant 0 : index
    %3 = vector.load %arg6[%c0_1, %c0_2] : memref<1x128xf32, #tpu.memory_space<vmem>>, vector<1x128xf32>
    %4 = vector.shape_cast %3 : vector<1x128xf32> to vector<1x128xf32>
    %5 = vector.broadcast %4 : vector<1x128xf32> to vector<8x128xf32>
    %cst = arith.constant 0.000000e+00 : f32
    %6 = vector.broadcast %cst : f32 to vector<8x128xf32>
    %c0_i32 = arith.constant 0 : i32
    %c8_i32 = arith.constant 8 : i32
    %7 = arith.addi %c0_i32, %c8_i32 : i32
    %c1_i32 = arith.constant 1 : i32
    %8:2 = scf.for %arg15 = %c0_i32 to %7 step %c1_i32 iter_args(%arg16 = %6, %arg17 = %6) -> (vector<8x128xf32>, vector<8x128xf32>)  : i32 {
      %25 = arith.index_cast %arg15 : i32 to index
      %c0_23 = arith.constant 0 : index
      %c0_24 = arith.constant 0 : index
      %26 = vector.load %arg0[%25, %c0_23, %c0_24] : memref<8x8x128xf32, #tpu.memory_space<vmem>>, vector<1x8x128xf32>
      %27 = vector.shape_cast %26 : vector<1x8x128xf32> to vector<8x128xf32>
      %c0_25 = arith.constant 0 : index
      %c0_26 = arith.constant 0 : index
      %28 = vector.load %arg2[%c0_25, %c0_26] : memref<128x512xf32, #tpu.memory_space<vmem>>, vector<128x512xf32>
      %cst_27 = arith.constant dense<0.000000e+00> : vector<8x512xf32>
      %29 = tpu.matmul %27, %28, %cst_27 {dimension_numbers = #tpu.dot_dimension_numbers<[1], [0], [0], [1], [0, 0, 1, 1], [], []>} : vector<8x128xf32>, vector<128x512xf32>, vector<8x512xf32> -> vector<8x512xf32>
      %c0_28 = arith.constant 0 : index
      %c0_29 = arith.constant 0 : index
      %30 = vector.load %arg3[%c0_28, %c0_29] : memref<128x512xf32, #tpu.memory_space<vmem>>, vector<128x512xf32>
      %cst_30 = arith.constant dense<0.000000e+00> : vector<8x512xf32>
      %31 = tpu.matmul %arg16, %30, %cst_30 {dimension_numbers = #tpu.dot_dimension_numbers<[1], [0], [0], [1], [0, 0, 1, 1], [], []>} : vector<8x128xf32>, vector<128x512xf32>, vector<8x512xf32> -> vector<8x512xf32>
      %32 = arith.addf %29, %31 : vector<8x512xf32>
      %33 = arith.addf %32, %2 : vector<8x512xf32>
      %34 = vector.extract_strided_slice %33 {offsets = [0, 0], sizes = [8, 128], strides = [1, 1]} : vector<8x512xf32> to vector<8x128xf32>
      %35 = arith.negf %34 : vector<8x128xf32>
      %36 = math.exp %35 : vector<8x128xf32>
      %cst_31 = arith.constant 1.000000e+00 : f32
      %37 = vector.broadcast %cst_31 : f32 to vector<8x128xf32>
      %38 = arith.addf %37, %36 : vector<8x128xf32>
      %39 = arith.divf %37, %38 : vector<8x128xf32>
      %40 = vector.extract_strided_slice %33 {offsets = [0, 128], sizes = [8, 128], strides = [1, 1]} : vector<8x512xf32> to vector<8x128xf32>
      %41 = arith.negf %40 : vector<8x128xf32>
      %42 = math.exp %41 : vector<8x128xf32>
      %cst_32 = arith.constant 1.000000e+00 : f32
      %43 = vector.broadcast %cst_32 : f32 to vector<8x128xf32>
      %44 = arith.addf %43, %42 : vector<8x128xf32>
      %45 = arith.divf %43, %44 : vector<8x128xf32>
      %46 = vector.extract_strided_slice %33 {offsets = [0, 256], sizes = [8, 128], strides = [1, 1]} : vector<8x512xf32> to vector<8x128xf32>
      %47 = math.tanh %46 : vector<8x128xf32>
      %48 = vector.extract_strided_slice %33 {offsets = [0, 384], sizes = [8, 128], strides = [1, 1]} : vector<8x512xf32> to vector<8x128xf32>
      %49 = arith.negf %48 : vector<8x128xf32>
      %50 = math.exp %49 : vector<8x128xf32>
      %cst_33 = arith.constant 1.000000e+00 : f32
      %51 = vector.broadcast %cst_33 : f32 to vector<8x128xf32>
      %52 = arith.addf %51, %50 : vector<8x128xf32>
      %53 = arith.divf %51, %52 : vector<8x128xf32>
      %54 = arith.mulf %45, %arg17 : vector<8x128xf32>
      %55 = arith.mulf %39, %47 : vector<8x128xf32>
      %56 = arith.addf %54, %55 : vector<8x128xf32>
      %57 = math.tanh %56 : vector<8x128xf32>
      %58 = arith.mulf %53, %57 : vector<8x128xf32>
      %c0_34 = arith.constant 0 : index
      %c0_35 = arith.constant 0 : index
      %59 = vector.load %arg5[%c0_34, %c0_35] : memref<128x128xf32, #tpu.memory_space<vmem>>, vector<128x128xf32>
      %cst_36 = arith.constant dense<0.000000e+00> : vector<8x128xf32>
      %60 = tpu.matmul %58, %59, %cst_36 {dimension_numbers = #tpu.dot_dimension_numbers<[1], [0], [0], [1], [0, 0, 1, 1], [], []>} : vector<8x128xf32>, vector<128x128xf32>, vector<8x128xf32> -> vector<8x128xf32>
      %61 = arith.addf %60, %5 : vector<8x128xf32>
      %62 = arith.index_cast %arg15 : i32 to index
      %c0_37 = arith.constant 0 : index
      %c0_38 = arith.constant 0 : index
      %63 = vector.load %arg12[%62, %c0_37, %c0_38] : memref<8x8x128xf32, #tpu.memory_space<vmem>>, vector<1x8x128xf32>
      %64 = vector.shape_cast %63 : vector<1x8x128xf32> to vector<8x128xf32>
      %65 = vector.shape_cast %61 : vector<8x128xf32> to vector<1x8x128xf32>
      tpu.vector_store %arg12[%62, %c0_37, %c0_38], %65 {strides = array<i32>} : memref<8x8x128xf32, #tpu.memory_space<vmem>>, vector<1x8x128xf32>,
      scf.yield %58, %56 : vector<8x128xf32>, vector<8x128xf32>
    }
    %c8_i32_3 = arith.constant 8 : i32
    %c0_4 = arith.constant 0 : index
    %c0_5 = arith.constant 0 : index
    %9 = vector.load %arg7[%c0_4, %c0_5] : memref<128x128xf32, #tpu.memory_space<vmem>>, vector<128x128xf32>
    %cst_6 = arith.constant dense<0.000000e+00> : vector<8x128xf32>
    %10 = tpu.matmul %8#1, %9, %cst_6 {dimension_numbers = #tpu.dot_dimension_numbers<[1], [0], [0], [1], [0, 0, 1, 1], [], []>} : vector<8x128xf32>, vector<128x128xf32>, vector<8x128xf32> -> vector<8x128xf32>
    %c0_7 = arith.constant 0 : index
    %c0_8 = arith.constant 0 : index
    %11 = vector.load %arg8[%c0_7, %c0_8] : memref<1x128xf32, #tpu.memory_space<vmem>>, vector<1x128xf32>
    %12 = vector.broadcast %11 : vector<1x128xf32> to vector<8x128xf32>
    %13 = arith.addf %10, %12 : vector<8x128xf32>
    %c0_9 = arith.constant 0 : index
    %c0_10 = arith.constant 0 : index
    %14 = vector.load %arg14[%c0_9, %c0_10] : memref<8x128xf32, #tpu.memory_space<vmem>>, vector<8x128xf32>
    tpu.vector_store %arg14[%c0_9, %c0_10], %13 {strides = array<i32>} : memref<8x128xf32, #tpu.memory_space<vmem>>, vector<8x128xf32>,
    %c0_11 = arith.constant 0 : index
    %c0_12 = arith.constant 0 : index
    %15 = vector.load %arg9[%c0_11, %c0_12] : memref<128x128xf32, #tpu.memory_space<vmem>>, vector<128x128xf32>
    %cst_13 = arith.constant dense<0.000000e+00> : vector<8x128xf32>
    %16 = tpu.matmul %8#0, %15, %cst_13 {dimension_numbers = #tpu.dot_dimension_numbers<[1], [0], [0], [1], [0, 0, 1, 1], [], []>} : vector<8x128xf32>, vector<128x128xf32>, vector<8x128xf32> -> vector<8x128xf32>
    %c0_14 = arith.constant 0 : index
    %c0_15 = arith.constant 0 : index
    %17 = vector.load %arg1[%c0_14, %c0_15] : memref<8x128xf32, #tpu.memory_space<vmem>>, vector<8x128xf32>
    %c0_16 = arith.constant 0 : index
    %c0_17 = arith.constant 0 : index
    %18 = vector.load %arg10[%c0_16, %c0_17] : memref<128x128xf32, #tpu.memory_space<vmem>>, vector<128x128xf32>
    %cst_18 = arith.constant dense<0.000000e+00> : vector<8x128xf32>
    %19 = tpu.matmul %17, %18, %cst_18 {dimension_numbers = #tpu.dot_dimension_numbers<[1], [0], [0], [1], [0, 0, 1, 1], [], []>} : vector<8x128xf32>, vector<128x128xf32>, vector<8x128xf32> -> vector<8x128xf32>
    %20 = arith.addf %16, %19 : vector<8x128xf32>
    %c0_19 = arith.constant 0 : index
    %c0_20 = arith.constant 0 : index
    %21 = vector.load %arg11[%c0_19, %c0_20] : memref<1x128xf32, #tpu.memory_space<vmem>>, vector<1x128xf32>
    %22 = vector.broadcast %21 : vector<1x128xf32> to vector<8x128xf32>
    %23 = arith.addf %20, %22 : vector<8x128xf32>
    %c0_21 = arith.constant 0 : index
    %c0_22 = arith.constant 0 : index
    %24 = vector.load %arg13[%c0_21, %c0_22] : memref<8x128xf32, #tpu.memory_space<vmem>>, vector<8x128xf32>
    tpu.vector_store %arg13[%c0_21, %c0_22], %23 {strides = array<i32>} : memref<8x128xf32, #tpu.memory_space<vmem>>, vector<8x128xf32>,
    return
  }
}

module attributes {stable_mosaic.version = 11 : i64} {
  func.func @_decoder_kernel(%arg0: memref<8x8x128xf32, #tpu.memory_space<vmem>>, %arg1: memref<8x128xf32, #tpu.memory_space<vmem>>, %arg2: memref<8x128xf32, #tpu.memory_space<vmem>>, %arg3: memref<8x8x128xf32, #tpu.memory_space<vmem>>, %arg4: memref<8x8xf32, #tpu.memory_space<vmem>>, %arg5: memref<128x512xf32, #tpu.memory_space<vmem>>, %arg6: memref<128x512xf32, #tpu.memory_space<vmem>>, %arg7: memref<1x512xf32, #tpu.memory_space<vmem>>, %arg8: memref<128x128xf32, #tpu.memory_space<vmem>>, %arg9: memref<128x128xf32, #tpu.memory_space<vmem>>, %arg10: memref<1x128xf32, #tpu.memory_space<vmem>>, %arg11: memref<8x8x128xf32, #tpu.memory_space<vmem>>) attributes {dimension_semantics = [], scalar_prefetch = 0 : i64, scratch_operands = 0 : i64, tpu.core_type = #tpu.core_type<tc>} {
    %c0 = arith.constant 0 : index
    %c0_0 = arith.constant 0 : index
    %c0_1 = arith.constant 0 : index
    %0 = vector.load %arg3[%c0, %c0_0, %c0_1] : memref<8x8x128xf32, #tpu.memory_space<vmem>>, vector<8x8x128xf32>
    %c0_2 = arith.constant 0 : index
    %c0_3 = arith.constant 0 : index
    %1 = vector.load %arg4[%c0_2, %c0_3] : memref<8x8xf32, #tpu.memory_space<vmem>>, vector<8x8xf32>
    %2 = vector.shape_cast %1 : vector<8x8xf32> to vector<8x1x8xf32>
    %c0_4 = arith.constant 0 : index
    %c0_5 = arith.constant 0 : index
    %3 = vector.load %arg7[%c0_4, %c0_5] : memref<1x512xf32, #tpu.memory_space<vmem>>, vector<1x512xf32>
    %4 = vector.shape_cast %3 : vector<1x512xf32> to vector<1x512xf32>
    %5 = vector.broadcast %4 : vector<1x512xf32> to vector<8x512xf32>
    %c0_6 = arith.constant 0 : index
    %c0_7 = arith.constant 0 : index
    %6 = vector.load %arg10[%c0_6, %c0_7] : memref<1x128xf32, #tpu.memory_space<vmem>>, vector<1x128xf32>
    %7 = vector.shape_cast %6 : vector<1x128xf32> to vector<1x128xf32>
    %8 = vector.broadcast %7 : vector<1x128xf32> to vector<8x128xf32>
    %c0_8 = arith.constant 0 : index
    %c0_9 = arith.constant 0 : index
    %9 = vector.load %arg1[%c0_8, %c0_9] : memref<8x128xf32, #tpu.memory_space<vmem>>, vector<8x128xf32>
    %c0_10 = arith.constant 0 : index
    %c0_11 = arith.constant 0 : index
    %10 = vector.load %arg2[%c0_10, %c0_11] : memref<8x128xf32, #tpu.memory_space<vmem>>, vector<8x128xf32>
    %c0_i32 = arith.constant 0 : i32
    %c8_i32 = arith.constant 8 : i32
    %11 = arith.addi %c0_i32, %c8_i32 : i32
    %c1_i32 = arith.constant 1 : i32
    %12:2 = scf.for %arg12 = %c0_i32 to %11 step %c1_i32 iter_args(%arg13 = %9, %arg14 = %10) -> (vector<8x128xf32>, vector<8x128xf32>)  : i32 {
      %13 = arith.index_cast %arg12 : i32 to index
      %c0_13 = arith.constant 0 : index
      %c0_14 = arith.constant 0 : index
      %14 = vector.load %arg0[%13, %c0_13, %c0_14] : memref<8x8x128xf32, #tpu.memory_space<vmem>>, vector<1x8x128xf32>
      %15 = vector.shape_cast %14 : vector<1x8x128xf32> to vector<8x128xf32>
      %c0_15 = arith.constant 0 : index
      %c0_16 = arith.constant 0 : index
      %16 = vector.load %arg5[%c0_15, %c0_16] : memref<128x512xf32, #tpu.memory_space<vmem>>, vector<128x512xf32>
      %cst = arith.constant dense<0.000000e+00> : vector<8x512xf32>
      %17 = tpu.matmul %15, %16, %cst {dimension_numbers = #tpu.dot_dimension_numbers<[1], [0], [0], [1], [0, 0, 1, 1], [], []>} : vector<8x128xf32>, vector<128x512xf32>, vector<8x512xf32> -> vector<8x512xf32>
      %c0_17 = arith.constant 0 : index
      %c0_18 = arith.constant 0 : index
      %18 = vector.load %arg6[%c0_17, %c0_18] : memref<128x512xf32, #tpu.memory_space<vmem>>, vector<128x512xf32>
      %cst_19 = arith.constant dense<0.000000e+00> : vector<8x512xf32>
      %19 = tpu.matmul %arg13, %18, %cst_19 {dimension_numbers = #tpu.dot_dimension_numbers<[1], [0], [0], [1], [0, 0, 1, 1], [], []>} : vector<8x128xf32>, vector<128x512xf32>, vector<8x512xf32> -> vector<8x512xf32>
      %20 = arith.addf %17, %19 : vector<8x512xf32>
      %21 = arith.addf %20, %5 : vector<8x512xf32>
      %22 = vector.extract_strided_slice %21 {offsets = [0, 0], sizes = [8, 128], strides = [1, 1]} : vector<8x512xf32> to vector<8x128xf32>
      %23 = arith.negf %22 : vector<8x128xf32>
      %24 = math.exp %23 : vector<8x128xf32>
      %cst_20 = arith.constant 1.000000e+00 : f32
      %25 = vector.broadcast %cst_20 : f32 to vector<8x128xf32>
      %26 = arith.addf %25, %24 : vector<8x128xf32>
      %27 = arith.divf %25, %26 : vector<8x128xf32>
      %28 = vector.extract_strided_slice %21 {offsets = [0, 128], sizes = [8, 128], strides = [1, 1]} : vector<8x512xf32> to vector<8x128xf32>
      %29 = arith.negf %28 : vector<8x128xf32>
      %30 = math.exp %29 : vector<8x128xf32>
      %cst_21 = arith.constant 1.000000e+00 : f32
      %31 = vector.broadcast %cst_21 : f32 to vector<8x128xf32>
      %32 = arith.addf %31, %30 : vector<8x128xf32>
      %33 = arith.divf %31, %32 : vector<8x128xf32>
      %34 = vector.extract_strided_slice %21 {offsets = [0, 256], sizes = [8, 128], strides = [1, 1]} : vector<8x512xf32> to vector<8x128xf32>
      %35 = math.tanh %34 : vector<8x128xf32>
      %36 = vector.extract_strided_slice %21 {offsets = [0, 384], sizes = [8, 128], strides = [1, 1]} : vector<8x512xf32> to vector<8x128xf32>
      %37 = arith.negf %36 : vector<8x128xf32>
      %38 = math.exp %37 : vector<8x128xf32>
      %cst_22 = arith.constant 1.000000e+00 : f32
      %39 = vector.broadcast %cst_22 : f32 to vector<8x128xf32>
      %40 = arith.addf %39, %38 : vector<8x128xf32>
      %41 = arith.divf %39, %40 : vector<8x128xf32>
      %42 = arith.mulf %33, %arg14 : vector<8x128xf32>
      %43 = arith.mulf %27, %35 : vector<8x128xf32>
      %44 = arith.addf %42, %43 : vector<8x128xf32>
      %45 = math.tanh %44 : vector<8x128xf32>
      %46 = arith.mulf %41, %45 : vector<8x128xf32>
      %47 = vector.shape_cast %46 : vector<8x128xf32> to vector<8x1x128xf32>
      "tpu.trace_start"() <{level = 10 : i32, message = "bqh,bsh->bqs"}> : () -> ()
      %cst_23 = arith.constant dense<0.000000e+00> : vector<8x1x8xf32>
      %48 = tpu.matmul %47, %0, %cst_23 {dimension_numbers = #tpu.dot_dimension_numbers<[2], [2], [1], [1], [0, 0, 0, 1, 1, 1], [0], [0]>} : vector<8x1x128xf32>, vector<8x8x128xf32>, vector<8x1x8xf32> -> vector<8x1x8xf32>
      "tpu.trace_stop"() : () -> ()
      %49 = arith.addf %48, %2 : vector<8x1x8xf32>
      %cst_24 = arith.constant dense<0xFF800000> : vector<8x1xf32>
      %50 = vector.multi_reduction <maximumf>, %49, %cst_24 [2] : vector<8x1x8xf32> to vector<8x1xf32>
      %51 = vector.shape_cast %50 : vector<8x1xf32> to vector<8x1x1xf32>
      %52 = vector.broadcast %51 : vector<8x1x1xf32> to vector<8x1x8xf32>
      %53 = arith.subf %49, %52 : vector<8x1x8xf32>
      %54 = math.exp %53 : vector<8x1x8xf32>
      %cst_25 = arith.constant dense<0.000000e+00> : vector<8x1xf32>
      %55 = vector.multi_reduction <add>, %54, %cst_25 [2] : vector<8x1x8xf32> to vector<8x1xf32>
      %56 = vector.shape_cast %55 : vector<8x1xf32> to vector<8x1x1xf32>
      %57 = tpu.reciprocal %56 {approx = true} : vector<8x1x1xf32> -> vector<8x1x1xf32>
      %58 = vector.broadcast %57 : vector<8x1x1xf32> to vector<8x1x8xf32>
      %59 = arith.mulf %54, %58 : vector<8x1x8xf32>
      "tpu.trace_start"() <{level = 10 : i32, message = "bqs,bsh->bqh"}> : () -> ()
      %cst_26 = arith.constant dense<0.000000e+00> : vector<8x1x128xf32>
      %60 = tpu.matmul %59, %0, %cst_26 {dimension_numbers = #tpu.dot_dimension_numbers<[2], [1], [1], [2], [0, 0, 0, 1, 1, 2], [0], [0]>} : vector<8x1x8xf32>, vector<8x8x128xf32>, vector<8x1x128xf32> -> vector<8x1x128xf32>
      "tpu.trace_stop"() : () -> ()
      %61 = vector.shape_cast %60 : vector<8x1x128xf32> to vector<8x128xf32>
      %c0_27 = arith.constant 0 : index
      %c0_28 = arith.constant 0 : index
      %62 = vector.load %arg8[%c0_27, %c0_28] : memref<128x128xf32, #tpu.memory_space<vmem>>, vector<128x128xf32>
      %cst_29 = arith.constant dense<0.000000e+00> : vector<8x128xf32>
      %63 = tpu.matmul %61, %62, %cst_29 {dimension_numbers = #tpu.dot_dimension_numbers<[1], [0], [0], [1], [0, 0, 1, 1], [], []>} : vector<8x128xf32>, vector<128x128xf32>, vector<8x128xf32> -> vector<8x128xf32>
      %c0_30 = arith.constant 0 : index
      %c0_31 = arith.constant 0 : index
      %64 = vector.load %arg9[%c0_30, %c0_31] : memref<128x128xf32, #tpu.memory_space<vmem>>, vector<128x128xf32>
      %cst_32 = arith.constant dense<0.000000e+00> : vector<8x128xf32>
      %65 = tpu.matmul %46, %64, %cst_32 {dimension_numbers = #tpu.dot_dimension_numbers<[1], [0], [0], [1], [0, 0, 1, 1], [], []>} : vector<8x128xf32>, vector<128x128xf32>, vector<8x128xf32> -> vector<8x128xf32>
      %66 = arith.addf %63, %65 : vector<8x128xf32>
      %67 = arith.addf %66, %8 : vector<8x128xf32>
      %68 = math.tanh %67 : vector<8x128xf32>
      %69 = arith.index_cast %arg12 : i32 to index
      %c0_33 = arith.constant 0 : index
      %c0_34 = arith.constant 0 : index
      %70 = vector.load %arg11[%69, %c0_33, %c0_34] : memref<8x8x128xf32, #tpu.memory_space<vmem>>, vector<1x8x128xf32>
      %71 = vector.shape_cast %70 : vector<1x8x128xf32> to vector<8x128xf32>
      %72 = vector.shape_cast %68 : vector<8x128xf32> to vector<1x8x128xf32>
      tpu.vector_store %arg11[%69, %c0_33, %c0_34], %72 {strides = array<i32>} : memref<8x8x128xf32, #tpu.memory_space<vmem>>, vector<1x8x128xf32>,
      scf.yield %46, %44 : vector<8x128xf32>, vector<8x128xf32>
    }
    %c8_i32_12 = arith.constant 8 : i32
    return
  }
}

module attributes {stable_mosaic.version = 11 : i64} {
  func.func @_proj_softmax_kernel(%arg0: i32, %arg1: memref<64x128xf32, #tpu.memory_space<vmem>>, %arg2: memref<128x128xf32, #tpu.memory_space<vmem>>, %arg3: memref<1x128xf32, #tpu.memory_space<vmem>>, %arg4: memref<64x128xf32, #tpu.memory_space<vmem>>, %arg5: memref<64x128xf32, #tpu.memory_space<vmem>>) attributes {dimension_semantics = [#tpu.dimension_semantics<parallel>], iteration_bounds = array<i64: 1>, scalar_prefetch = 0 : i64, scratch_operands = 0 : i64, tpu.core_type = #tpu.core_type<tc>, window_params = [{transform_indices = @transform_0, window_bounds = array<i64: 64, 128>}, {pipeline_mode = #tpu.pipeline_mode<synchronous>, transform_indices = @transform_1, window_bounds = array<i64: 128, 128>}, {pipeline_mode = #tpu.pipeline_mode<synchronous>, transform_indices = @transform_2, window_bounds = array<i64: 1, 128>}, {transform_indices = @transform_3, window_bounds = array<i64: 64, 128>}, {transform_indices = @transform_4, window_bounds = array<i64: 64, 128>}]} {
    %c0 = arith.constant 0 : index
    %c0_0 = arith.constant 0 : index
    %0 = vector.load %arg1[%c0, %c0_0] : memref<64x128xf32, #tpu.memory_space<vmem>>, vector<64x128xf32>
    %c0_1 = arith.constant 0 : index
    %c0_2 = arith.constant 0 : index
    %1 = vector.load %arg2[%c0_1, %c0_2] : memref<128x128xf32, #tpu.memory_space<vmem>>, vector<128x128xf32>
    %cst = arith.constant dense<0.000000e+00> : vector<64x128xf32>
    %2 = tpu.matmul %0, %1, %cst {dimension_numbers = #tpu.dot_dimension_numbers<[1], [0], [0], [1], [0, 0, 1, 1], [], []>} : vector<64x128xf32>, vector<128x128xf32>, vector<64x128xf32> -> vector<64x128xf32>
    %c0_3 = arith.constant 0 : index
    %c0_4 = arith.constant 0 : index
    %3 = vector.load %arg3[%c0_3, %c0_4] : memref<1x128xf32, #tpu.memory_space<vmem>>, vector<1x128xf32>
    %4 = vector.broadcast %3 : vector<1x128xf32> to vector<64x128xf32>
    %5 = arith.addf %2, %4 : vector<64x128xf32>
    %c0_5 = arith.constant 0 : index
    %c0_6 = arith.constant 0 : index
    %6 = vector.load %arg4[%c0_5, %c0_6] : memref<64x128xf32, #tpu.memory_space<vmem>>, vector<64x128xf32>
    tpu.vector_store %arg4[%c0_5, %c0_6], %5 {strides = array<i32>} : memref<64x128xf32, #tpu.memory_space<vmem>>, vector<64x128xf32>,
    %cst_7 = arith.constant dense<0xFF800000> : vector<64xf32>
    %7 = vector.multi_reduction <maximumf>, %5, %cst_7 [1] : vector<64x128xf32> to vector<64xf32>
    %8 = vector.shape_cast %7 : vector<64xf32> to vector<64x1xf32>
    %9 = vector.broadcast %8 : vector<64x1xf32> to vector<64x128xf32>
    %10 = arith.subf %5, %9 : vector<64x128xf32>
    %11 = math.exp %10 : vector<64x128xf32>
    %cst_8 = arith.constant dense<0.000000e+00> : vector<64xf32>
    %12 = vector.multi_reduction <add>, %11, %cst_8 [1] : vector<64x128xf32> to vector<64xf32>
    %13 = vector.shape_cast %12 : vector<64xf32> to vector<64x1xf32>
    %14 = vector.broadcast %13 : vector<64x1xf32> to vector<64x128xf32>
    %15 = arith.divf %11, %14 : vector<64x128xf32>
    %c0_9 = arith.constant 0 : index
    %c0_10 = arith.constant 0 : index
    %16 = vector.load %arg5[%c0_9, %c0_10] : memref<64x128xf32, #tpu.memory_space<vmem>>, vector<64x128xf32>
    tpu.vector_store %arg5[%c0_9, %c0_10], %15 {strides = array<i32>} : memref<64x128xf32, #tpu.memory_space<vmem>>, vector<64x128xf32>,
    return
  }
  func.func @transform_0(%arg0: i32) -> (i32, i32) {
    %c0_i32 = arith.constant 0 : i32
    %c0_i32_0 = arith.constant 0 : i32
    return %arg0, %c0_i32 : i32, i32
  }
  func.func @transform_1(%arg0: i32) -> (i32, i32) {
    %c0_i32 = arith.constant 0 : i32
    %c0_i32_0 = arith.constant 0 : i32
    %c0_i32_1 = arith.constant 0 : i32
    return %c0_i32, %c0_i32_0 : i32, i32
  }
  func.func @transform_2(%arg0: i32) -> (i32, i32) {
    %c0_i32 = arith.constant 0 : i32
    %c0_i32_0 = arith.constant 0 : i32
    %c0_i32_1 = arith.constant 0 : i32
    return %c0_i32, %c0_i32_0 : i32, i32
  }
  func.func @transform_3(%arg0: i32) -> (i32, i32) {
    %c0_i32 = arith.constant 0 : i32
    %c0_i32_0 = arith.constant 0 : i32
    return %arg0, %c0_i32 : i32, i32
  }
  func.func @transform_4(%arg0: i32) -> (i32, i32) {
    %c0_i32 = arith.constant 0 : i32
    %c0_i32_0 = arith.constant 0 : i32
    return %arg0, %c0_i32 : i32, i32
  }
}

</mosaic_0001>

<bundles_post_ra>
// kernel: seq_model_forward.5
= control target key start
LH: loop header
LB: loop body
LE: loop exit
PB: predicated region body
PF: predicated region fallthrough
CT: control target
= control target key end

     0   :  { %s545_s1 = inlined_call_operand.vmem [shape: f32[128,128], index: 1, kind: input, shape index: {}]   ;;  %s546_s0 = inlined_call_operand.vmem [shape: f32[64,128], index: 0, kind: input, shape index: {}]   ;;  %s547_s2 = inlined_call_operand.vmem [shape: f32[1,128], index: 2, kind: input, shape index: {}]   ;;  %s548_s3 = inlined_call_operand.vmem [shape: f32[64,128], index: 3, kind: output, shape index: {0}]   ;;  %s549_s4 = inlined_call_operand.vmem [shape: f32[64,128], index: 4, kind: output, shape index: {1}]  }
   0x1   :  { %v24_v0 = vld [vmem:[%s545_s1] sm:$0xff]  ;;  %v25_v1 = vld [vmem:[%s545_s1 + $0x8] sm:$0xff]  ;;  %v26_v2 = vld [vmem:[%s545_s1 + $0x10] sm:$0xff] }
   0x2   :  { %v317_v3 = vpack.c.bf16 %v25_v1, %v24_v0  ;;  %v27_v4 = vld [vmem:[%s545_s1 + $0x18] sm:$0xff]  ;;  %v28_v6 = vld [vmem:[%s545_s1 + $0x20] sm:$0xff]  ;;  %v29_v7 = vld [vmem:[%s545_s1 + $0x28] sm:$0xff] }
   0x3   :  { %v321_v5 = vpack.c.bf16 %v27_v4, %v26_v2  ;;  %v325_v8 = vpack.c.bf16 %v29_v7, %v28_v6  ;;  %v16_v9 = vld [vmem:[%s546_s0] sm:$0xff]  ;;  %v30_v11 = vld [vmem:[%s545_s1 + $0x30] sm:$0xff]  ;;  %v31_v12 = vld [vmem:[%s545_s1 + $0x38] sm:$0xff] }
   0x4   :  { %318 = vmatprep.subr.bf16.mxu0 %v317_v3  ;;  %349 = vmatprep.subr.bf16.mxu1 %v317_v3  ;;  %v20_v10 = vld [vmem:[%s546_s0 + $0x20] sm:$0xff]  ;;  %v329_v13 = vpack.c.bf16 %v31_v12, %v30_v11  ;;  %v33_v15 = vld [vmem:[%s545_s1 + $0x48] sm:$0xff]  ;;  %v34_v17 = vld [vmem:[%s545_s1 + $0x50] sm:$0xff] }
   0x5   :  { %320 = vmatpush3.bf16.msra.mxu0 %v317_v3  ;;  %357 = vmatpush3.bf16.msra.mxu1 %v317_v3  ;;  %v32_v14 = vld [vmem:[%s545_s1 + $0x40] sm:$0xff]  ;;  %v35_v18 = vld [vmem:[%s545_s1 + $0x58] sm:$0xff]  ;;  %v37_v21 = vld [vmem:[%s545_s1 + $0x68] sm:$0xff] }
   0x6   :  { %322 = vmatprep.subr.bf16.mxu0 %v321_v5  ;;  %350 = vmatprep.subr.bf16.mxu1 %v321_v5  ;;  %v333_v16 = vpack.c.bf16 %v33_v15, %v32_v14  ;;  %v337_v19 = vpack.c.bf16 %v35_v18, %v34_v17  ;;  %v36_v20 = vld [vmem:[%s545_s1 + $0x60] sm:$0xff]  ;;  %v38_v23 = vld [vmem:[%s545_s1 + $0x70] sm:$0xff]  ;;  %v39_v24 = vld [vmem:[%s545_s1 + $0x78] sm:$0xff] }
   0x7   :  { %305 = vmatprep.mubr.f32.mxu0 %v16_v9  ;;  %311 = vmatprep.mubr.f32.mxu1 %v20_v10  ;;  %v341_v22 = vpack.c.bf16 %v37_v21, %v36_v20  ;;  %v345_v25 = vpack.c.bf16 %v39_v24, %v38_v23  ;;  %v17_v26 = vld [vmem:[%s546_s0 + $0x8] sm:$0xff]  ;;  %v18_v28 = vld [vmem:[%s546_s0 + $0x10] sm:$0xff]  ;;  %v19_v30 = vld [vmem:[%s546_s0 + $0x18] sm:$0xff] }
   0x8   :  { %v21_v27 = vld [vmem:[%s546_s0 + $0x28] sm:$0xff]  ;;  %v22_v29 = vld [vmem:[%s546_s0 + $0x30] sm:$0xff]  ;;  %v23_v31 = vld [vmem:[%s546_s0 + $0x38] sm:$0xff] }
   0x9   :  { %324 = vmatpush3.bf16.msra.mxu0 %v321_v5  ;;  %358 = vmatpush3.bf16.msra.mxu1 %v321_v5  ;;  %v248_v32 = vld [vmem:[%s547_s2] ss:$0 sm:$0xff] }
   0xa   :  { %326 = vmatprep.subr.bf16.mxu0 %v325_v8  ;;  %351 = vmatprep.subr.bf16.mxu1 %v325_v8 }
   0xd   :  { %328 = vmatpush3.bf16.msra.mxu0 %v325_v8  ;;  %359 = vmatpush3.bf16.msra.mxu1 %v325_v8 }
   0xe   :  { %330 = vmatprep.subr.bf16.mxu0 %v329_v13  ;;  %352 = vmatprep.subr.bf16.mxu1 %v329_v13 }
  0x11   :  { %332 = vmatpush3.bf16.msra.mxu0 %v329_v13  ;;  %360 = vmatpush3.bf16.msra.mxu1 %v329_v13 }
  0x12   :  { %334 = vmatprep.subr.bf16.mxu0 %v333_v16  ;;  %353 = vmatprep.subr.bf16.mxu1 %v333_v16 }
  0x15   :  { %336 = vmatpush3.bf16.msra.mxu0 %v333_v16  ;;  %361 = vmatpush3.bf16.msra.mxu1 %v333_v16 }
  0x16   :  { %338 = vmatprep.subr.bf16.mxu0 %v337_v19  ;;  %354 = vmatprep.subr.bf16.mxu1 %v337_v19 }
  0x19   :  { %340 = vmatpush3.bf16.msra.mxu0 %v337_v19  ;;  %362 = vmatpush3.bf16.msra.mxu1 %v337_v19 }
  0x1a   :  { %342 = vmatprep.subr.bf16.mxu0 %v341_v22  ;;  %355 = vmatprep.subr.bf16.mxu1 %v341_v22 }
  0x1d   :  { %344 = vmatpush3.bf16.msra.mxu0 %v341_v22  ;;  %363 = vmatpush3.bf16.msra.mxu1 %v341_v22 }
  0x1e   :  { %346 = vmatprep.subr.bf16.mxu0 %v345_v25  ;;  %356 = vmatprep.subr.bf16.mxu1 %v345_v25 }
  0x21   :  { %348 = vmatpush3.bf16.msra.mxu0 %v345_v25  ;;  %364 = vmatpush3.bf16.msra.mxu1 %v345_v25 }
  0x24   :  { %306 = vmatmul.mubr.f32.vlgmr.msra.gmra.mrb[0].mxu0 %v17_v26  ;;  %312 = vmatmul.mubr.f32.vlgmr.msra.gmra.mrb[0].mxu1 %v21_v27 }
  0x25   :  { %308 = vmatprep.mubr.f32.mxu0 %v18_v28  ;;  %314 = vmatprep.mubr.f32.mxu1 %v22_v29 }
  0x28   :  { %309 = vmatmul.mubr.f32.gmra.mrb[2].mxu0 %v19_v30  ;;  %315 = vmatmul.mubr.f32.gmra.mrb[2].mxu1 %v23_v31 }
  0xf7   :  { %v307_v33 = vpop.f32.mrb[0].mxu0  ;;  %v313_v34 = vpop.f32.mrb[0].mxu1 }
  0xf8   :  { %v119_v35 = vadd.f32 %v307_v33, %v248_v32  ;;  %v139_v36 = vadd.f32 %v313_v34, %v248_v32  ;;  %v113_v37 = vpop.f32.mrb[1].mxu0  ;;  %v133_v38 = vpop.f32.mrb[1].mxu1 }
  0xf9   :  { %v114_v39 = vadd.f32 %v248_v32, %v113_v37  ;;  %v134_v40 = vadd.f32 %v248_v32, %v133_v38 }
  0xfa   :  { %153 = vst [vmem:[%s548_s3 + $0x8] sm:$0xff] %v119_v35  ;;  %157 = vst [vmem:[%s548_s3 + $0x28] sm:$0xff] %v139_v36  ;;  %170 = vmax.xlane.f32.xlu1 %v139_v36  ;;  %162 = vmax.xlane.f32.xlu0 %v119_v35 }
  0xfb   :  { %152 = vst [vmem:[%s548_s3] sm:$0xff] %v114_v39  ;;  %v310_v41 = vpop.f32.mrb[2].mxu0  ;;  %156 = vst [vmem:[%s548_s3 + $0x20] sm:$0xff] %v134_v40  ;;  %v316_v42 = vpop.f32.mrb[2].mxu1 }
  0xfc   :  { %v129_v43 = vadd.f32 %v310_v41, %v248_v32  ;;  %v123_v44 = vpop.f32.mrb[3].mxu0  ;;  %v149_v45 = vadd.f32 %v316_v42, %v248_v32  ;;  %v143_v46 = vpop.f32.mrb[3].mxu1 }
  0xfd   :  { %v124_v47 = vadd.f32 %v248_v32, %v123_v44  ;;  %v144_v48 = vadd.f32 %v248_v32, %v143_v46 }
  0xfe   :  { %155 = vst [vmem:[%s548_s3 + $0x18] sm:$0xff] %v129_v43  ;;  %166 = vmax.xlane.f32.xlu1 %v129_v43  ;;  %160 = vmax.xlane.f32.xlu0 %v114_v39  ;;  %159 = vst [vmem:[%s548_s3 + $0x38] sm:$0xff] %v149_v45 }
  0xff   :  { %154 = vst [vmem:[%s548_s3 + $0x10] sm:$0xff] %v124_v47  ;;  %158 = vst [vmem:[%s548_s3 + $0x30] sm:$0xff] %v144_v48 }
 0x102   :  { %164 = vmax.xlane.f32.xlu1 %v124_v47  ;;  %168 = vmax.xlane.f32.xlu0 %v134_v40 }
 0x106   :  { %174 = vmax.xlane.f32.xlu1 %v149_v45  ;;  %172 = vmax.xlane.f32.xlu0 %v144_v48 }
 0x187   :  { %v171_v49 = vpop.xlane.xlu1 %170  ;;  %v163_v50 = vpop.xlane.xlu0 %162 }
 0x188   :  { %v181_v51 = vsub.f32 %v139_v36, %v171_v49  ;;  %v177_v52 = vsub.f32 %v119_v35, %v163_v50 }
 0x18a   :  { %v186_v53 = vmul.f32 1.442695, %v177_v52  ;;  %v194_v56 = vmul.f32 1.442695, %v181_v51 }
 0x18b   :  { %v167_v54 = vpop.xlane.xlu1 %166  ;;  %v161_v55 = vpop.xlane.xlu0 %160 }
 0x18c   :  { %v179_v57 = vsub.f32 %v129_v43, %v167_v54  ;;  %v176_v58 = vsub.f32 %v114_v39, %v161_v55  ;;  %365 = vpow2.f32 %v186_v53 }
 0x18d   :  { %367 = vpow2.f32 %v194_v56 }
 0x18e   :  { %v184_v59 = vmul.f32 1.442695, %v176_v58  ;;  %v190_v62 = vmul.f32 1.442695, %v179_v57 }
 0x18f   :  { %v165_v60 = vpop.xlane.xlu1 %164  ;;  %v169_v61 = vpop.xlane.xlu0 %168 }
 0x190   :  { %v180_v63 = vsub.f32 %v134_v40, %v169_v61  ;;  %369 = vpow2.f32 %v184_v59  ;;  %v178_v0 = vsub.f32 %v124_v47, %v165_v60 }
 0x191   :  { %371 = vpow2.f32 %v190_v62 }
 0x192   :  { %v192_v1 = vmul.f32 1.442695, %v180_v63  ;;  %v188_v5 = vmul.f32 1.442695, %v178_v0 }
 0x193   :  { %v175_v2 = vpop.xlane.xlu1 %174  ;;  %v173_v3 = vpop.xlane.xlu0 %172 }
 0x194   :  { %v183_v4 = vsub.f32 %v149_v45, %v175_v2  ;;  %373 = vpow2.f32 %v192_v1  ;;  %v182_v6 = vsub.f32 %v144_v48, %v173_v3 }
 0x196   :  { %v198_v7 = vmul.f32 1.442695, %v183_v4  ;;  %v366_v8 = vpop.eup %365  ;;  %v196_v9 = vmul.f32 1.442695, %v182_v6 }
 0x197   :  { %202 = vadd.xlane.f32.xlu1 %v366_v8  ;;  %v368_v10 = vpop.eup %367 }
 0x198   :  { %375 = vpow2.f32 %v198_v7 }
 0x199   :  { %377 = vpow2.f32 %v188_v5 }
 0x19a   :  { %v370_v11 = vpop.eup %369  ;;  %379 = vpow2.f32 %v196_v9 }
 0x19b   :  { %210 = vadd.xlane.f32.xlu1 %v368_v10  ;;  %200 = vadd.xlane.f32.xlu0 %v370_v11  ;;  %v372_v12 = vpop.eup %371 }
 0x19e   :  { %v374_v13 = vpop.eup %373 }
 0x19f   :  { %206 = vadd.xlane.f32.xlu1 %v372_v12  ;;  %208 = vadd.xlane.f32.xlu0 %v374_v13 }
 0x1a2   :  { %v376_v14 = vpop.eup %375 }
 0x1a3   :  { %v378_v15 = vpop.eup %377  ;;  %214 = vadd.xlane.f32.xlu1 %v376_v14 }
 0x1a4   :  { %204 = vadd.xlane.f32.xlu0 %v378_v15  ;;  %v380_v16 = vpop.eup %379 }
 0x1a8   :  { %212 = vadd.xlane.f32.xlu0 %v380_v16 }
 0x224   :  { %v203_v17 = vpop.xlane.xlu1 %202 }
 0x225   :  { %381 = vrcp.f32 %v203_v17 }
 0x228   :  { %v211_v18 = vpop.xlane.xlu1 %210  ;;  %v201_v19 = vpop.xlane.xlu0 %200 }
 0x229   :  { %383 = vrcp.f32 %v211_v18 }
 0x22a   :  { %385 = vrcp.f32 %v201_v19 }
 0x22c   :  { %v207_v20 = vpop.xlane.xlu1 %206  ;;  %v209_v21 = vpop.xlane.xlu0 %208 }
 0x22d   :  { %387 = vrcp.f32 %v207_v20 }
 0x22e   :  { %389 = vrcp.f32 %v209_v21 }
 0x22f   :  { %v382_v22 = vpop.eup %381 }
 0x230   :  { %v219_v23 = vmul.f32 %v382_v22, %v366_v8  ;;  %v215_v24 = vpop.xlane.xlu1 %214 }
 0x231   :  { %v205_v25 = vpop.xlane.xlu0 %204  ;;  %391 = vrcp.f32 %v215_v24 }
 0x232   :  { %233 = vst [vmem:[%s549_s4 + $0x8] sm:$0xff] %v219_v23  ;;  %393 = vrcp.f32 %v205_v25 }
 0x233   :  { %v384_v26 = vpop.eup %383 }
 0x234   :  { %v386_v27 = vpop.eup %385  ;;  %v227_v28 = vmul.f32 %v384_v26, %v368_v10 }
 0x235   :  { %v213_v29 = vpop.xlane.xlu0 %212  ;;  %v217_v30 = vmul.f32 %v386_v27, %v370_v11 }
 0x236   :  { %395 = vrcp.f32 %v213_v29  ;;  %237 = vst [vmem:[%s549_s4 + $0x28] sm:$0xff] %v227_v28 }
 0x237   :  { %v388_v31 = vpop.eup %387  ;;  %232 = vst [vmem:[%s549_s4] sm:$0xff] %v217_v30 }
 0x238   :  { %v390_v32 = vpop.eup %389  ;;  %v223_v33 = vmul.f32 %v388_v31, %v372_v12 }
 0x239   :  { %v225_v34 = vmul.f32 %v390_v32, %v374_v13 }
 0x23a   :  { %235 = vst [vmem:[%s549_s4 + $0x18] sm:$0xff] %v223_v33 }
 0x23b   :  { %v392_v35 = vpop.eup %391  ;;  %236 = vst [vmem:[%s549_s4 + $0x20] sm:$0xff] %v225_v34 }
 0x23c   :  { %v394_v36 = vpop.eup %393  ;;  %v231_v37 = vmul.f32 %v392_v35, %v376_v14 }
 0x23d   :  { %v221_v38 = vmul.f32 %v394_v36, %v378_v15 }
 0x23e   :  { %239 = vst [vmem:[%s549_s4 + $0x38] sm:$0xff] %v231_v37 }
 0x23f   :  { %234 = vst [vmem:[%s549_s4 + $0x10] sm:$0xff] %v221_v38 }
 0x240   :  { %v396_v39 = vpop.eup %395 }
 0x241   :  { %v229_v40 = vmul.f32 %v396_v39, %v380_v16 }
 0x243   :  { %238 = vst [vmem:[%s549_s4 + $0x30] sm:$0xff] %v229_v40 }

// kernel: seq_model_forward.3
= control target key start
LH: loop header
LB: loop body
LE: loop exit
PB: predicated region body
PF: predicated region fallthrough
CT: control target
= control target key end

     0   :  { %20 = vsyncpa [#allocation3], 0  ;;  %s2098_s0 = inlined_call_operand.vmem [shape: f32[8,8,128], index: 0, kind: input, shape index: {}]   ;;  %s2099_s1 = inlined_call_operand.vmem [shape: f32[8,128], index: 1, kind: input, shape index: {}]   ;;  %s2100_s2 = inlined_call_operand.vmem [shape: f32[128,512], index: 2, kind: input, shape index: {}]   ;;  %s2101_s3 = inlined_call_operand.hbm [shape: f32[128,512], index: 3, kind: input, shape index: {}]   ;;  %s2102_s4 = inlined_call_operand.vmem [shape: f32[1,512], index: 4, kind: input, shape index: {}]   ;;  %s2103_s5 = inlined_call_operand.vmem [shape: f32[128,128], index: 5, kind: input, shape index: {}]   ;;  %s2104_s6 = inlined_call_operand.vmem [shape: f32[1,128], index: 6, kind: input, shape index: {}]   ;;  %s2105_s7 = inlined_call_operand.hbm [shape: f32[128,128], index: 7, kind: input, shape index: {}]   ;;  %s2106_s8 = inlined_call_operand.vmem [shape: f32[1,128], index: 8, kind: input, shape index: {}]   ;;  %s2107_s9 = inlined_call_operand.hbm [shape: f32[128,128], index: 9, kind: input, shape index: {}]   ;;  %s2108_s10 = inlined_call_operand.hbm [shape: f32[128,128], index: 10, kind: input, shape index: {}]   ;;  %s2109_s11 = inlined_call_operand.vmem [shape: f32[1,128], index: 11, kind: input, shape index: {}]   ;;  %s2110_s12 = inlined_call_operand.vmem [shape: f32[8,8,128], index: 12, kind: output, shape index: {0}]   ;;  %s2111_s13 = inlined_call_operand.vmem [shape: f32[8,128], index: 13, kind: output, shape index: {1}]   ;;  %s2112_s14 = inlined_call_operand.vmem [shape: f32[8,128], index: 14, kind: output, shape index: {2}]  }
   0x1   :  { %21 = vsyncpa [#allocation5], 0 }
   0x2   :  { %22 = vsyncpa [#allocation8], 0  ;;  %s1588_s29 = smov [#allocation4]   ;;  %s1470_s17 = scalar_lea.hbm %s2105_s7, 2048 }
   0x3   :  { %s52_s30 = sshll.u32 %s1588_s29, 4  ;;  %p1471_p0 = scmp.ne.s32.totalorder %s2105_s7, %s1470_s17  ;;  %s53_s30 = int_to_ptr.vmem [resolvable:$true] %s52_s30 }
   0x4   :  { %p1474_p1 = scmp.lt.u32.totalorder %s1470_s17, %s2105_s7 }
   0x6   :  { %p1476_p2 = pnand %p1474_p1, %p1471_p0 }
   0x8   :  { %1479 = shalt.err (!%p1476_p2)
}
   0x9   :  { %s1480_s22 = scalar_lea.vmem %s53_s30, 2048  ;;  %p1485_p4 = scmp.lt.s32.totalorder %s53_s30, %s53_s30 }
   0xa   :  { %p1481_p3 = scmp.ne.s32.totalorder %s53_s30, %s1480_s22  ;;  %p1486_p5 = scmp.lt.s32.totalorder %s1480_s22, %s1480_s22 }
   0xc   :  { %p1487_p6 = por %p1486_p5, %p1485_p4 }
   0xe   :  { %p1488_p7 = pnand %p1487_p6, %p1481_p3 }
  0x10   :  { %1491 = shalt.err (!%p1488_p7)
}
  0x11   :  { %s2113_s23 = smov 128   ;;  %s1590_s24 = smov 8  }
  0x12   :  { %58 = dma.hbm_to_vmem [thread:$0]  %s2105_s7, 2048, %s53_s30, [#allocation5], %s2113_s23, %s2113_s23, %s1590_s24  }
  0x13   :  { %s1591_s27 = smov [#allocation2]   ;;  %s1492_s16 = scalar_lea.hbm %s2101_s3, 8192 }
  0x14   :  { %s34_s28 = sshll.u32 %s1591_s27, 4  ;;  %p1493_p8 = scmp.ne.s32.totalorder %s2101_s3, %s1492_s16  ;;  %s35_s28 = int_to_ptr.vmem [resolvable:$true] %s34_s28 }
  0x15   :  { %p1496_p9 = scmp.lt.u32.totalorder %s1492_s16, %s2101_s3 }
  0x17   :  { %p1498_p10 = pnand %p1496_p9, %p1493_p8 }
  0x19   :  { %1501 = shalt.err (!%p1498_p10)
}
  0x1a   :  { %s1502_s21 = scalar_lea.vmem %s35_s28, 8192  ;;  %p1507_p12 = scmp.lt.s32.totalorder %s35_s28, %s35_s28 }
  0x1b   :  { %p1503_p11 = scmp.ne.s32.totalorder %s35_s28, %s1502_s21  ;;  %p1508_p13 = scmp.lt.s32.totalorder %s1502_s21, %s1502_s21 }
  0x1d   :  { %p1509_p0 = por %p1508_p13, %p1507_p12 }
  0x1f   :  { %p1510_p1 = pnand %p1509_p0, %p1503_p11 }
  0x21   :  { %1513 = shalt.err (!%p1510_p1)
}
  0x22   :  { %s1592_s7 = smov 512   ;;  %s1593_s30 = smov 32  }
  0x23   :  { %40 = dma.hbm_to_vmem [thread:$0]  %s2101_s3, 8192, %s35_s28, [#allocation3], %s1592_s7, %s1592_s7, %s1593_s30  }
  0x24   :  { %s1594_s26 = smov [#allocation6]   ;;  %s1595_s29 = smov [#allocation7]  }
  0x25   :  { %s66_s27 = sshll.u32 %s1594_s26, 4  ;;  %s78_s15 = sshll.u32 %s1595_s29, 4  ;;  %s67_s27 = int_to_ptr.vmem [resolvable:$true] %s66_s27  ;;  %s1704_s15 = int_to_ptr.vmem [resolvable:$true] %s78_s15 }
  0x26   :  { %s1514_s18 = scalar_lea.hbm %s2107_s9, 2048 }
  0x27   :  { %p1515_p2 = scmp.ne.s32.totalorder %s2107_s9, %s1514_s18  ;;  %p1518_p3 = scmp.lt.u32.totalorder %s1514_s18, %s2107_s9 }
  0x29   :  { %p1520_p4 = pnand %p1518_p3, %p1515_p2 }
  0x2b   :  { %1523 = shalt.err (!%p1520_p4)
}
  0x2c   :  { %s1524_s3 = scalar_lea.vmem %s67_s27, 2048  ;;  %p1529_p6 = scmp.lt.s32.totalorder %s67_s27, %s67_s27 }
  0x2d   :  { %p1525_p5 = scmp.ne.s32.totalorder %s67_s27, %s1524_s3  ;;  %p1530_p7 = scmp.lt.s32.totalorder %s1524_s3, %s1524_s3 }
  0x2f   :  { %p1531_p8 = por %p1530_p7, %p1529_p6 }
  0x31   :  { %p1532_p9 = pnand %p1531_p8, %p1525_p5 }
  0x33   :  { %1535 = shalt.err (!%p1532_p9)
}
  0x34   :  { %s2115_s28 = smov 128   ;;  %s1536_s23 = scalar_lea.hbm %s2108_s10, 2048 }
  0x35   :  { %72 = dma.hbm_to_vmem [thread:$0]  %s2107_s9, 2048, %s67_s27, [#allocation5], %s2115_s28, %s2115_s28, %s1590_s24  }
  0x36   :  { %p1537_p10 = scmp.ne.s32.totalorder %s2108_s10, %s1536_s23  ;;  %p1540_p11 = scmp.lt.u32.totalorder %s1536_s23, %s2108_s10 }
  0x38   :  { %p1542_p12 = pnand %p1540_p11, %p1537_p10 }
  0x3a   :  { %1545 = shalt.err (!%p1542_p12)
}
  0x3b   :  { %s1546_s18 = scalar_lea.vmem %s1704_s15, 2048  ;;  %p1551_p0 = scmp.lt.s32.totalorder %s1704_s15, %s1704_s15 }
  0x3c   :  { %p1547_p13 = scmp.ne.s32.totalorder %s1704_s15, %s1546_s18  ;;  %p1552_p1 = scmp.lt.s32.totalorder %s1546_s18, %s1546_s18 }
  0x3e   :  { %p1553_p2 = por %p1552_p1, %p1551_p0 }
  0x40   :  { %p1554_p3 = pnand %p1553_p2, %p1547_p13 }
  0x42   :  { %1557 = shalt.err (!%p1554_p3)
}
  0x43   :  { %84 = dma.hbm_to_vmem [thread:$0]  %s2108_s10, 2048, %s1704_s15, [#allocation8], %s2115_s28, %s2115_s28, %s1590_s24  }
  0x44   :  { %1570 = dma.done.wait [#allocation3], 8192  }
  0x45   :  { %1571 = vsyncadd [#allocation3], 4294959104 }
  0x46   :  { %1572 = dma.done.wait [#allocation5], 4096  }
  0x47   :  { %1573 = vsyncadd [#allocation5], 4294963200 }
  0x48   :  { %1574 = dma.done.wait [#allocation8], 2048  }
  0x49   :  { %1575 = vsyncadd [#allocation8], 4294965248  ;;  %v101_v0 = vlaneseq  ;;  %v99_v6 = vld [vmem:[%s2102_s4] sm:$0xf]  ;;  %v1757_v12 = vmov 0.0   ;;  %v1759_v13 = vmov 0.0  }
  0x4a   :  { %v1747_v7 = vld [vmem:[%s2104_s6] ss:$0 sm:$0xff]  ;;  %s1761_s10 = smov 0  }
  0x4b   :  { %v102_v1 = vshrl.u32 %v101_v0, 7 }
  0x4d   :  { %v103_v2 = vsub.s32 0, %v102_v1  ;;  %v107_v3 = vsub.s32 1, %v102_v1  ;;  %v111_v4 = vsub.s32 2, %v102_v1  ;;  %v115_v5 = vsub.s32 3, %v102_v1 }
  0x4f   :  { %v1749_v8 = vrot.slane %v99_v6, %v103_v2  ;;  %v1751_v9 = vrot.slane %v99_v6, %v107_v3  ;;  %v1753_v10 = vrot.slane %v99_v6, %v111_v4  ;;  %v1755_v11 = vrot.slane %v99_v6, %v115_v5 }
  0x50 LB: > { %v204_v14 = vld [vmem:[#allocation2 + $0x8] sm:$0xff]  ;;  %v206_v16 = vld [vmem:[#allocation2 + $0x18] sm:$0xff]  ;;  %v203_v19 = vld [vmem:[#allocation2] sm:$0xff]  ;;  %v1596_v21 = vmov 0.0   ;;  %s974_s24 = sshll.u32 %s1586_s10, 3  ;;  %vm1598_vm0 = vmmov 0   ;;  %s1586_s10 = sphi %s1761_s10, %s133_s10   ;;  %v1582_v13 = vphi %v1759_v13, %v2119_v13   ;;  %v1578_v12 = vphi %v1757_v12, %v2118_v12  }
  0x51   : > { %v208_v15 = vld [vmem:[#allocation2 + $0x28] sm:$0xff]  ;;  %v210_v18 = vld [vmem:[#allocation2 + $0x38] sm:$0xff]  ;;  %v207_v20 = vld [vmem:[#allocation2 + $0x20] sm:$0xff]  ;;  %331 = vmatprep.mubr.f32.mxu0 %v1596_v21  ;;  %402 = vmatprep.mubr.f32.mxu1 %v1596_v21  ;;  %s137_s7 = scalar_lea.vmem %s2098_s0, %s974_s24  ;;  %s665_s3 = scalar_lea.vmem %s2110_s12, %s974_s24 }
  0x52   : > { %v1188_v17 = vpack.c.bf16 %v208_v15, %v204_v14  ;;  %v1220_v22 = vpack.c.bf16 %v210_v18, %v206_v16  ;;  %v1190_v23 = vpack.c.bf16 %v207_v20, %v203_v19  ;;  %v205_v24 = vld [vmem:[#allocation2 + $0x10] sm:$0xff]  ;;  %v212_v26 = vld [vmem:[#allocation2 + $0x48] sm:$0xff]  ;;  %v214_v29 = vld [vmem:[#allocation2 + $0x58] sm:$0xff]  ;;  %s133_s10 = sadd.s32 1, %s1586_s10  }
  0x53   : > { %v209_v25 = vld [vmem:[#allocation2 + $0x30] sm:$0xff]  ;;  %v216_v28 = vld [vmem:[#allocation2 + $0x68] sm:$0xff]  ;;  %v218_v30 = vld [vmem:[#allocation2 + $0x78] sm:$0xff]  ;;  %p130_p4 = scmp.ge.s32.totalorder %s133_s10, 8  }
  0x54   : > { %1189 = vmatprep.subr.bf16.mxu0 %v1188_v17  ;;  %v1222_v27 = vpack.c.bf16 %v209_v25, %v205_v24  ;;  %1221 = vmatprep.subr.bf16.mxu1 %v1220_v22  ;;  %v1192_v31 = vpack.c.bf16 %v216_v28, %v212_v26  ;;  %v1224_v32 = vpack.c.bf16 %v218_v30, %v214_v29  ;;  %v211_v33 = vld [vmem:[#allocation2 + $0x40] sm:$0xff]  ;;  %v213_v35 = vld [vmem:[#allocation2 + $0x50] sm:$0xff]  ;;  %v220_v38 = vld [vmem:[#allocation2 + $0x88] sm:$0xff]  ;;  %vm1600_vm1 = vmmov (%p130_p4), 0  }
  0x55   : > { %1191 = vmatpush1.bf16.msra.mxu0 %v1190_v23  ;;  %v215_v34 = vld [vmem:[#allocation2 + $0x60] sm:$0xff]  ;;  %v217_v37 = vld [vmem:[#allocation2 + $0x70] sm:$0xff]  ;;  %v224_v39 = vld [vmem:[#allocation2 + $0xa8] sm:$0xff] }
  0x56   : > { %1223 = vmatpush1.bf16.msra.mxu1 %v1222_v27  ;;  %v1194_v36 = vpack.c.bf16 %v215_v34, %v211_v33  ;;  %1193 = vmatprep.subr.bf16.mxu0 %v1192_v31  ;;  %v1226_v40 = vpack.c.bf16 %v217_v37, %v213_v35  ;;  %v1196_v41 = vpack.c.bf16 %v224_v39, %v220_v38  ;;  %v222_v42 = vld [vmem:[#allocation2 + $0x98] sm:$0xff]  ;;  %v219_v44 = vld [vmem:[#allocation2 + $0x80] sm:$0xff]  ;;  %v221_v47 = vld [vmem:[#allocation2 + $0x90] sm:$0xff] }
  0x57   : > { %1225 = vmatprep.subr.bf16.mxu1 %v1224_v32  ;;  %v226_v43 = vld [vmem:[#allocation2 + $0xb8] sm:$0xff]  ;;  %v223_v46 = vld [vmem:[#allocation2 + $0xa0] sm:$0xff]  ;;  %v225_v48 = vld [vmem:[#allocation2 + $0xb0] sm:$0xff] }
  0x58   : > { %v1228_v45 = vpack.c.bf16 %v226_v43, %v222_v42  ;;  %v1198_v49 = vpack.c.bf16 %v223_v46, %v219_v44  ;;  %v228_v50 = vld [vmem:[#allocation2 + $0xc8] sm:$0xff]  ;;  %v230_v52 = vld [vmem:[#allocation2 + $0xd8] sm:$0xff]  ;;  %v1230_v53 = vpack.c.bf16 %v225_v48, %v221_v47  ;;  %v227_v56 = vld [vmem:[#allocation2 + $0xc0] sm:$0xff] }
  0x59   : > { %1195 = vmatpush1.bf16.msra.mxu0 %v1194_v36  ;;  %v232_v51 = vld [vmem:[#allocation2 + $0xe8] sm:$0xff]  ;;  %v234_v55 = vld [vmem:[#allocation2 + $0xf8] sm:$0xff]  ;;  %v231_v57 = vld [vmem:[#allocation2 + $0xe0] sm:$0xff] }
  0x5a   : > { %1227 = vmatpush1.bf16.msra.mxu1 %v1226_v40  ;;  %1197 = vmatprep.subr.bf16.mxu0 %v1196_v41  ;;  %v1200_v54 = vpack.c.bf16 %v232_v51, %v228_v50  ;;  %v1232_v58 = vpack.c.bf16 %v234_v55, %v230_v52  ;;  %v229_v59 = vld [vmem:[#allocation2 + $0xd0] sm:$0xff]  ;;  %v236_v61 = vld [vmem:[#allocation2 + $0x108] sm:$0xff]  ;;  %v238_v63 = vld [vmem:[#allocation2 + $0x118] sm:$0xff]  ;;  %v1202_v1 = vpack.c.bf16 %v231_v57, %v227_v56 }
  0x5b   : > { %1229 = vmatprep.subr.bf16.mxu1 %v1228_v45  ;;  %v233_v60 = vld [vmem:[#allocation2 + $0xf0] sm:$0xff]  ;;  %v240_v62 = vld [vmem:[#allocation2 + $0x128] sm:$0xff]  ;;  %v242_v0 = vld [vmem:[#allocation2 + $0x138] sm:$0xff] }
  0x5c   : > { %v1234_v2 = vpack.c.bf16 %v233_v60, %v229_v59  ;;  %v1204_v3 = vpack.c.bf16 %v240_v62, %v236_v61  ;;  %v235_v4 = vld [vmem:[#allocation2 + $0x100] sm:$0xff]  ;;  %v237_v6 = vld [vmem:[#allocation2 + $0x110] sm:$0xff]  ;;  %v1236_v14 = vpack.c.bf16 %v242_v0, %v238_v63  ;;  %v244_v16 = vld [vmem:[#allocation2 + $0x148] sm:$0xff] }
  0x5d   : > { %1199 = vmatpush1.bf16.msra.mxu0 %v1198_v49  ;;  %v239_v5 = vld [vmem:[#allocation2 + $0x120] sm:$0xff]  ;;  %v241_v15 = vld [vmem:[#allocation2 + $0x130] sm:$0xff]  ;;  %v248_v17 = vld [vmem:[#allocation2 + $0x168] sm:$0xff] }
  0x5e   : > { %1231 = vmatpush1.bf16.msra.mxu1 %v1230_v53  ;;  %1201 = vmatprep.subr.bf16.mxu0 %v1200_v54  ;;  %v246_v18 = vld [vmem:[#allocation2 + $0x158] sm:$0xff]  ;;  %v1206_v20 = vpack.c.bf16 %v239_v5, %v235_v4  ;;  %v1238_v22 = vpack.c.bf16 %v241_v15, %v237_v6  ;;  %v1208_v23 = vpack.c.bf16 %v248_v17, %v244_v16  ;;  %v243_v24 = vld [vmem:[#allocation2 + $0x140] sm:$0xff]  ;;  %v245_v26 = vld [vmem:[#allocation2 + $0x150] sm:$0xff] }
  0x5f   : > { %1233 = vmatprep.subr.bf16.mxu1 %v1232_v58  ;;  %v250_v19 = vld [vmem:[#allocation2 + $0x178] sm:$0xff]  ;;  %v247_v25 = vld [vmem:[#allocation2 + $0x160] sm:$0xff]  ;;  %v249_v28 = vld [vmem:[#allocation2 + $0x170] sm:$0xff] }
  0x60   : > { %v1240_v27 = vpack.c.bf16 %v250_v19, %v246_v18  ;;  %v252_v29 = vld [vmem:[#allocation2 + $0x188] sm:$0xff]  ;;  %v254_v31 = vld [vmem:[#allocation2 + $0x198] sm:$0xff]  ;;  %v1210_v33 = vpack.c.bf16 %v247_v25, %v243_v24  ;;  %v1242_v34 = vpack.c.bf16 %v249_v28, %v245_v26  ;;  %v251_v36 = vld [vmem:[#allocation2 + $0x180] sm:$0xff] }
  0x61   : > { %1203 = vmatpush1.bf16.msra.mxu0 %v1202_v1  ;;  %v256_v30 = vld [vmem:[#allocation2 + $0x1a8] sm:$0xff]  ;;  %v258_v32 = vld [vmem:[#allocation2 + $0x1b8] sm:$0xff]  ;;  %v255_v37 = vld [vmem:[#allocation2 + $0x1a0] sm:$0xff] }
  0x62   : > { %1235 = vmatpush1.bf16.msra.mxu1 %v1234_v2  ;;  %1205 = vmatprep.subr.bf16.mxu0 %v1204_v3  ;;  %v1212_v35 = vpack.c.bf16 %v256_v30, %v252_v29  ;;  %v253_v38 = vld [vmem:[#allocation2 + $0x190] sm:$0xff]  ;;  %v1244_v39 = vpack.c.bf16 %v258_v32, %v254_v31  ;;  %v260_v41 = vld [vmem:[#allocation2 + $0x1c8] sm:$0xff]  ;;  %v262_v43 = vld [vmem:[#allocation2 + $0x1d8] sm:$0xff]  ;;  %v1214_v45 = vpack.c.bf16 %v255_v37, %v251_v36 }
  0x63   : > { %1237 = vmatprep.subr.bf16.mxu1 %v1236_v14  ;;  %v257_v40 = vld [vmem:[#allocation2 + $0x1b0] sm:$0xff]  ;;  %v264_v42 = vld [vmem:[#allocation2 + $0x1e8] sm:$0xff]  ;;  %v266_v44 = vld [vmem:[#allocation2 + $0x1f8] sm:$0xff] }
  0x64   : > { %v1246_v46 = vpack.c.bf16 %v257_v40, %v253_v38  ;;  %v1216_v47 = vpack.c.bf16 %v264_v42, %v260_v41  ;;  %v259_v48 = vld [vmem:[#allocation2 + $0x1c0] sm:$0xff]  ;;  %v261_v50 = vld [vmem:[#allocation2 + $0x1d0] sm:$0xff]  ;;  %v1248_v51 = vpack.c.bf16 %v266_v44, %v262_v43  ;;  %v140_v53 = vld [vmem:[%s2100_s2 + $0x8] sm:$0xff] }
  0x65   : > { %1207 = vmatpush1.bf16.msra.mxu0 %v1206_v20  ;;  %v263_v49 = vld [vmem:[#allocation2 + $0x1e0] sm:$0xff]  ;;  %v265_v52 = vld [vmem:[#allocation2 + $0x1f0] sm:$0xff]  ;;  %v144_v54 = vld [vmem:[%s2100_s2 + $0x28] sm:$0xff] }
  0x66   : > { %1239 = vmatpush1.bf16.msra.mxu1 %v1238_v22  ;;  %1209 = vmatprep.subr.bf16.mxu0 %v1208_v23  ;;  %v142_v55 = vld [vmem:[%s2100_s2 + $0x18] sm:$0xff]  ;;  %v1218_v57 = vpack.c.bf16 %v263_v49, %v259_v48  ;;  %v1250_v58 = vpack.c.bf16 %v265_v52, %v261_v50  ;;  %v1252_v59 = vpack.c.bf16 %v144_v54, %v140_v53  ;;  %v139_v60 = vld [vmem:[%s2100_s2] sm:$0xff]  ;;  %v141_v62 = vld [vmem:[%s2100_s2 + $0x10] sm:$0xff] }
  0x67   : > { %1241 = vmatprep.subr.bf16.mxu1 %v1240_v27  ;;  %v146_v56 = vld [vmem:[%s2100_s2 + $0x38] sm:$0xff]  ;;  %v143_v61 = vld [vmem:[%s2100_s2 + $0x20] sm:$0xff]  ;;  %v145_v0 = vld [vmem:[%s2100_s2 + $0x30] sm:$0xff] }
  0x68   : > { %v1284_v63 = vpack.c.bf16 %v146_v56, %v142_v55  ;;  %v148_v1 = vld [vmem:[%s2100_s2 + $0x48] sm:$0xff]  ;;  %v150_v3 = vld [vmem:[%s2100_s2 + $0x58] sm:$0xff]  ;;  %v1254_v5 = vpack.c.bf16 %v143_v61, %v139_v60  ;;  %v1286_v6 = vpack.c.bf16 %v145_v0, %v141_v62  ;;  %v147_v15 = vld [vmem:[%s2100_s2 + $0x40] sm:$0xff] }
  0x69   : > { %1211 = vmatpush1.bf16.msra.mxu0 %v1210_v33  ;;  %v152_v2 = vld [vmem:[%s2100_s2 + $0x68] sm:$0xff]  ;;  %v154_v4 = vld [vmem:[%s2100_s2 + $0x78] sm:$0xff]  ;;  %v151_v16 = vld [vmem:[%s2100_s2 + $0x60] sm:$0xff] }
  0x6a   : > { %1243 = vmatpush1.bf16.msra.mxu1 %v1242_v34  ;;  %1213 = vmatprep.subr.bf16.mxu0 %v1212_v35  ;;  %v1256_v14 = vpack.c.bf16 %v152_v2, %v148_v1  ;;  %v149_v17 = vld [vmem:[%s2100_s2 + $0x50] sm:$0xff]  ;;  %v1288_v18 = vpack.c.bf16 %v154_v4, %v150_v3  ;;  %v156_v20 = vld [vmem:[%s2100_s2 + $0x88] sm:$0xff]  ;;  %v158_v23 = vld [vmem:[%s2100_s2 + $0x98] sm:$0xff]  ;;  %v1258_v25 = vpack.c.bf16 %v151_v16, %v147_v15 }
  0x6b   : > { %1245 = vmatprep.subr.bf16.mxu1 %v1244_v39  ;;  %v153_v19 = vld [vmem:[%s2100_s2 + $0x70] sm:$0xff]  ;;  %v160_v22 = vld [vmem:[%s2100_s2 + $0xa8] sm:$0xff]  ;;  %v162_v24 = vld [vmem:[%s2100_s2 + $0xb8] sm:$0xff] }
  0x6c   : > { %v1290_v26 = vpack.c.bf16 %v153_v19, %v149_v17  ;;  %v1260_v27 = vpack.c.bf16 %v160_v22, %v156_v20  ;;  %v155_v28 = vld [vmem:[%s2100_s2 + $0x80] sm:$0xff]  ;;  %v157_v30 = vld [vmem:[%s2100_s2 + $0x90] sm:$0xff]  ;;  %v164_v32 = vld [vmem:[%s2100_s2 + $0xc8] sm:$0xff] }
  0x6d   : > { %1215 = vmatpush1.bf16.msra.mxu0 %v1214_v45  ;;  %v159_v29 = vld [vmem:[%s2100_s2 + $0xa0] sm:$0xff]  ;;  %v161_v31 = vld [vmem:[%s2100_s2 + $0xb0] sm:$0xff]  ;;  %v168_v33 = vld [vmem:[%s2100_s2 + $0xe8] sm:$0xff] }
  0x6e   : > { %1247 = vmatpush1.bf16.msra.mxu1 %v1246_v46  ;;  %1217 = vmatprep.subr.bf16.mxu0 %v1216_v47  ;;  %v166_v34 = vld [vmem:[%s2100_s2 + $0xd8] sm:$0xff]  ;;  %v1262_v36 = vpack.c.bf16 %v159_v29, %v155_v28  ;;  %v1294_v37 = vpack.c.bf16 %v161_v31, %v157_v30  ;;  %v1264_v38 = vpack.c.bf16 %v168_v33, %v164_v32  ;;  %v163_v39 = vld [vmem:[%s2100_s2 + $0xc0] sm:$0xff]  ;;  %v165_v41 = vld [vmem:[%s2100_s2 + $0xd0] sm:$0xff] }
  0x6f   : > { %1249 = vmatprep.subr.bf16.mxu1 %v1248_v51  ;;  %v170_v35 = vld [vmem:[%s2100_s2 + $0xf8] sm:$0xff]  ;;  %v167_v40 = vld [vmem:[%s2100_s2 + $0xe0] sm:$0xff]  ;;  %v169_v43 = vld [vmem:[%s2100_s2 + $0xf0] sm:$0xff] }
  0x70   : > { %v1296_v42 = vpack.c.bf16 %v170_v35, %v166_v34  ;;  %v172_v44 = vld [vmem:[%s2100_s2 + $0x108] sm:$0xff]  ;;  %v174_v46 = vld [vmem:[%s2100_s2 + $0x118] sm:$0xff]  ;;  %v1266_v48 = vpack.c.bf16 %v167_v40, %v163_v39  ;;  %v1298_v49 = vpack.c.bf16 %v169_v43, %v165_v41  ;;  %v171_v51 = vld [vmem:[%s2100_s2 + $0x100] sm:$0xff]  ;;  %v1597_v41 = vmov 0.0|0.0  }
  0x71   : > { %1219 = vmatpush1.bf16.msra.mxu0 %v1218_v57  ;;  %v176_v45 = vld [vmem:[%s2100_s2 + $0x128] sm:$0xff]  ;;  %v178_v47 = vld [vmem:[%s2100_s2 + $0x138] sm:$0xff]  ;;  %v175_v52 = vld [vmem:[%s2100_s2 + $0x120] sm:$0xff] }
  0x72   : > { %1251 = vmatpush1.bf16.msra.mxu1 %v1250_v58  ;;  %1253 = vmatprep.subr.bf16.mxu0 %v1252_v59  ;;  %v1268_v50 = vpack.c.bf16 %v176_v45, %v172_v44  ;;  %v173_v53 = vld [vmem:[%s2100_s2 + $0x110] sm:$0xff]  ;;  %v1300_v54 = vpack.c.bf16 %v178_v47, %v174_v46  ;;  %v180_v56 = vld [vmem:[%s2100_s2 + $0x148] sm:$0xff]  ;;  %v182_v58 = vld [vmem:[%s2100_s2 + $0x158] sm:$0xff]  ;;  %v1270_v60 = vpack.c.bf16 %v175_v52, %v171_v51 }
  0x73   : > { %1285 = vmatprep.subr.bf16.mxu1 %v1284_v63  ;;  %v177_v55 = vld [vmem:[%s2100_s2 + $0x130] sm:$0xff]  ;;  %v184_v57 = vld [vmem:[%s2100_s2 + $0x168] sm:$0xff]  ;;  %v186_v59 = vld [vmem:[%s2100_s2 + $0x178] sm:$0xff] }
  0x74   : > { %332 = vmatmul.mubr.f32.vlgmr.msra.gmra.mrb[0].mxu0 %v1582_v13  ;;  %v1302_v61 = vpack.c.bf16 %v177_v55, %v173_v53  ;;  %v1272_v62 = vpack.c.bf16 %v184_v57, %v180_v56  ;;  %v179_v63 = vld [vmem:[%s2100_s2 + $0x140] sm:$0xff]  ;;  %v181_v1 = vld [vmem:[%s2100_s2 + $0x150] sm:$0xff]  ;;  %v1304_v2 = vpack.c.bf16 %v186_v59, %v182_v58  ;;  %v188_v4 = vld [vmem:[%s2100_s2 + $0x188] sm:$0xff] }
  0x75   : > { %403 = vmatmul.mubr.f32.vlgmr.msra.gmra.mrb[0].mxu1 %v1582_v13  ;;  %1255 = vmatpush1.bf16.msra.mxu0 %v1254_v5  ;;  %v1292_v13 = vpack.c.bf16 %v162_v24, %v158_v23  ;;  %v183_v0 = vld [vmem:[%s2100_s2 + $0x160] sm:$0xff]  ;;  %v185_v3 = vld [vmem:[%s2100_s2 + $0x170] sm:$0xff]  ;;  %v192_v5 = vld [vmem:[%s2100_s2 + $0x1a8] sm:$0xff] }
  0x76   : > { %1287 = vmatpush1.bf16.msra.mxu1 %v1286_v6  ;;  %1257 = vmatprep.subr.bf16.mxu0 %v1256_v14  ;;  %v190_v6 = vld [vmem:[%s2100_s2 + $0x198] sm:$0xff]  ;;  %v1274_v15 = vpack.c.bf16 %v183_v0, %v179_v63  ;;  %v1306_v16 = vpack.c.bf16 %v185_v3, %v181_v1  ;;  %v1276_v17 = vpack.c.bf16 %v192_v5, %v188_v4  ;;  %v191_v19 = vld [vmem:[%s2100_s2 + $0x1a0] sm:$0xff]  ;;  %v189_v20 = vld [vmem:[%s2100_s2 + $0x190] sm:$0xff] }
  0x77   : > { %1289 = vmatprep.subr.bf16.mxu1 %v1288_v18  ;;  %473 = vmatprep.mubr.f32.mxu0 %v1596_v21  ;;  %v194_v14 = vld [vmem:[%s2100_s2 + $0x1b8] sm:$0xff]  ;;  %v187_v18 = vld [vmem:[%s2100_s2 + $0x180] sm:$0xff]  ;;  %v193_v23 = vld [vmem:[%s2100_s2 + $0x1b0] sm:$0xff] }
  0x78   : > { %544 = vmatprep.mubr.f32.mxu1 %v1596_v21  ;;  %v1308_v22 = vpack.c.bf16 %v194_v14, %v190_v6  ;;  %v196_v24 = vld [vmem:[%s2100_s2 + $0x1c8] sm:$0xff]  ;;  %v1278_v28 = vpack.c.bf16 %v191_v19, %v187_v18  ;;  %v1310_v29 = vpack.c.bf16 %v193_v23, %v189_v20  ;;  %v199_v31 = vld [vmem:[%s2100_s2 + $0x1e0] sm:$0xff]  ;;  %v197_v33 = vld [vmem:[%s2100_s2 + $0x1d0] sm:$0xff] }
  0x79   : > { %1259 = vmatpush1.bf16.msra.mxu0 %v1258_v25  ;;  %v200_v25 = vld [vmem:[%s2100_s2 + $0x1e8] sm:$0xff]  ;;  %v201_v34 = vld [vmem:[%s2100_s2 + $0x1f0] sm:$0xff]  ;;  %v582_v43 = vld [vmem:[%s2103_s5 + $0x18] sm:$0xff] }
  0x7a   : > { %1291 = vmatpush1.bf16.msra.mxu1 %v1290_v26  ;;  %1261 = vmatprep.subr.bf16.mxu0 %v1260_v27  ;;  %v198_v26 = vld [vmem:[%s2100_s2 + $0x1d8] sm:$0xff]  ;;  %v1280_v30 = vpack.c.bf16 %v200_v25, %v196_v24  ;;  %v580_v39 = vld [vmem:[%s2103_s5 + $0x8] sm:$0xff]  ;;  %v583_v45 = vld [vmem:[%s2103_s5 + $0x20] sm:$0xff] }
  0x7b   : > { %1293 = vmatprep.subr.bf16.mxu1 %v1292_v13  ;;  %v202_v27 = vld [vmem:[%s2100_s2 + $0x1f8] sm:$0xff]  ;;  %v195_v13 = vld [vmem:[%s2100_s2 + $0x1c0] sm:$0xff]  ;;  %v584_v46 = vld [vmem:[%s2103_s5 + $0x28] sm:$0xff] }
  0x7c   : > { %v1312_v32 = vpack.c.bf16 %v202_v27, %v198_v26  ;;  %v1282_v35 = vpack.c.bf16 %v199_v31, %v195_v13  ;;  %v1323_v47 = vpack.c.bf16 %v584_v46, %v583_v45  ;;  %v587_v51 = vld [vmem:[%s2103_s5 + $0x40] sm:$0xff]  ;;  %v588_v52 = vld [vmem:[%s2103_s5 + $0x48] sm:$0xff]  ;;  %v590_v55 = vld [vmem:[%s2103_s5 + $0x58] sm:$0xff] }
  0x7d   : > { %1263 = vmatpush1.bf16.msra.mxu0 %v1262_v36  ;;  %v1314_v36 = vpack.c.bf16 %v201_v34, %v197_v33  ;;  %v1329_v53 = vpack.c.bf16 %v588_v52, %v587_v51  ;;  %v591_v56 = vld [vmem:[%s2103_s5 + $0x60] sm:$0xff]  ;;  %v592_v58 = vld [vmem:[%s2103_s5 + $0x68] sm:$0xff]  ;;  %v674_v45 = vld [vmem:[#allocation4 + $0x38] sm:$0xff] (%p130_p4) }
  0x7e   : > { %1295 = vmatpush1.bf16.msra.mxu1 %v1294_v37  ;;  %1265 = vmatprep.subr.bf16.mxu0 %v1264_v38  ;;  %v138_v37 = vld [vmem:[%s137_s7] sm:$0xff]  ;;  %v1335_v59 = vpack.c.bf16 %v592_v58, %v591_v56  ;;  %v676_v51 = vld [vmem:[#allocation4 + $0x48] sm:$0xff] (%p130_p4)  ;;  %v677_v56 = vld [vmem:[#allocation4 + $0x50] sm:$0xff] (%p130_p4) }
  0x7f   : > { %1297 = vmatprep.subr.bf16.mxu1 %v1296_v42  ;;  %v579_v38 = vld [vmem:[%s2103_s5] sm:$0xff]  ;;  %v581_v42 = vld [vmem:[%s2103_s5 + $0x10] sm:$0xff] }
  0x80   : > { %v1317_v40 = vpack.c.bf16 %v580_v39, %v579_v38  ;;  %v1320_v44 = vpack.c.bf16 %v582_v43, %v581_v42  ;;  %v670_v39 = vld [vmem:[#allocation4 + $0x18] sm:$0xff] (%p130_p4) }
  0x81   : > { %1267 = vmatpush1.bf16.msra.mxu0 %v1266_v48  ;;  %v585_v48 = vld [vmem:[%s2103_s5 + $0x30] sm:$0xff]  ;;  %v781_v43 = vld [vmem:[#allocation7 + $0x18] sm:$0xff] (%p130_p4) }
  0x82   : > { %1299 = vmatpush1.bf16.msra.mxu1 %v1298_v49  ;;  %1269 = vmatprep.subr.bf16.mxu0 %v1268_v50  ;;  %v586_v49 = vld [vmem:[%s2103_s5 + $0x38] sm:$0xff] }
  0x83   : > { %1301 = vmatprep.subr.bf16.mxu1 %v1300_v54  ;;  %v1326_v50 = vpack.c.bf16 %v586_v49, %v585_v48  ;;  %v589_v54 = vld [vmem:[%s2103_s5 + $0x50] sm:$0xff]  ;;  %v783_v48 = vld [vmem:[#allocation7 + $0x28] sm:$0xff] (%p130_p4) }
  0x84   : > { %v1332_v57 = vpack.c.bf16 %v590_v55, %v589_v54  ;;  %v785_v54 = vld [vmem:[#allocation7 + $0x38] sm:$0xff] (%p130_p4) }
  0x85   : > { %1271 = vmatpush1.bf16.msra.mxu0 %v1270_v60  ;;  %v593_v60 = vld [vmem:[%s2103_s5 + $0x70] sm:$0xff] }
  0x86   : > { %1303 = vmatpush1.bf16.msra.mxu1 %v1302_v61  ;;  %1273 = vmatprep.subr.bf16.mxu0 %v1272_v62  ;;  %v594_v61 = vld [vmem:[%s2103_s5 + $0x78] sm:$0xff] }
  0x87   : > { %1305 = vmatprep.subr.bf16.mxu1 %v1304_v2  ;;  %v1338_v62 = vpack.c.bf16 %v594_v61, %v593_v60  ;;  %v787_v60 = vld [vmem:[#allocation7 + $0x48] sm:$0xff] (%p130_p4) }
  0x89   : > { %1275 = vmatpush1.bf16.msra.mxu0 %v1274_v15 }
  0x8a   : > { %1307 = vmatpush1.bf16.msra.mxu1 %v1306_v16  ;;  %1277 = vmatprep.subr.bf16.mxu0 %v1276_v17 }
  0x8b   : > { %1309 = vmatprep.subr.bf16.mxu1 %v1308_v22 }
  0x8d   : > { %1279 = vmatpush1.bf16.msra.mxu0 %v1278_v28 }
  0x8e   : > { %1311 = vmatpush1.bf16.msra.mxu1 %v1310_v29  ;;  %1281 = vmatprep.subr.bf16.mxu0 %v1280_v30 }
  0x8f   : > { %1313 = vmatprep.subr.bf16.mxu1 %v1312_v32 }
  0x91   : > { %1283 = vmatpush1.bf16.msra.mxu0 %v1282_v35  ;;  %v668_v35 = vld [vmem:[#allocation4 + $0x8] sm:$0xff] (%p130_p4) }
  0x92   : > { %1315 = vmatpush1.bf16.msra.mxu1 %v1314_v36  ;;  %1316 = vmatprep.subr.bf16.mxu0 %v1597_v41  ;;  %v669_v36 = vld [vmem:[#allocation4 + $0x10] sm:$0xff] (%p130_p4) }
  0x94   : > { %474 = vmatmul.mubr.f32.vlgmr.msra.gmra.mrb[0].mxu0 %v138_v37 }
  0x95   : > { %545 = vmatmul.mubr.f32.vlgmr.msra.gmra.mrb[0].mxu1 %v138_v37  ;;  %1318 = vmatpush3.bf16.msra.mxu0 %v1317_v40  ;;  %v1599_v37 = vmov (%p130_p4), 0.0|0.0   ;;  %v1601_v40 = vmov (%p130_p4), 0.0  }
  0x96   : > { %1319 = vmatprep.subr.bf16.mxu0 %v1597_v41  ;;  %1080 = vmatprep.mubr.msk.f32.mxu0 %vm1598_vm0, %v1596_v21 }
  0x97   :  { %1364 = vmatprep.subr.bf16.mxu1 (%p130_p4), %v1599_v37  ;;  %1150 = vmatprep.mubr.msk.f32.mxu1 (%p130_p4), %vm1600_vm1, %v1601_v40 }
  0x99   : > { %1321 = vmatpush3.bf16.msra.mxu0 %v1320_v44  ;;  %v673_v44 = vld [vmem:[#allocation4 + $0x30] sm:$0xff] (%p130_p4) }
  0x9a   : > { %1322 = vmatprep.subr.bf16.mxu0 %v1597_v41  ;;  %v1350_v49 = vpack.c.bf16 (%p130_p4), %v674_v45, %v673_v44 }
  0x9d   : > { %1324 = vmatpush3.bf16.msra.mxu0 %v1323_v47  ;;  %v782_v47 = vld [vmem:[#allocation7 + $0x20] sm:$0xff] (%p130_p4) }
  0x9e   : > { %1325 = vmatprep.subr.bf16.mxu0 %v1597_v41  ;;  %v1371_v52 = vpack.c.bf16 (%p130_p4), %v783_v48, %v782_v47 }
  0xa1   : > { %1327 = vmatpush3.bf16.msra.mxu0 %v1326_v50  ;;  %v675_v50 = vld [vmem:[#allocation4 + $0x40] sm:$0xff] (%p130_p4) }
  0xa2   : > { %1328 = vmatprep.subr.bf16.mxu0 %v1597_v41  ;;  %v1353_v55 = vpack.c.bf16 (%p130_p4), %v676_v51, %v675_v50 }
  0xa5   : > { %1330 = vmatpush3.bf16.msra.mxu0 %v1329_v53  ;;  %v784_v53 = vld [vmem:[#allocation7 + $0x30] sm:$0xff] (%p130_p4) }
  0xa6   : > { %1331 = vmatprep.subr.bf16.mxu0 %v1597_v41  ;;  %v1374_v58 = vpack.c.bf16 (%p130_p4), %v785_v54, %v784_v53 }
  0xa9   : > { %1333 = vmatpush3.bf16.msra.mxu0 %v1332_v57  ;;  %v678_v57 = vld [vmem:[#allocation4 + $0x58] sm:$0xff] (%p130_p4) }
  0xaa   : > { %1334 = vmatprep.subr.bf16.mxu0 %v1597_v41  ;;  %v1356_v61 = vpack.c.bf16 (%p130_p4), %v678_v57, %v677_v56 }
  0xad   : > { %1336 = vmatpush3.bf16.msra.mxu0 %v1335_v59  ;;  %v786_v59 = vld [vmem:[#allocation7 + $0x40] sm:$0xff] (%p130_p4) }
  0xae   : > { %1337 = vmatprep.subr.bf16.mxu0 %v1597_v41  ;;  %v1344_v41 = vpack.c.bf16 (%p130_p4), %v670_v39, %v669_v36  ;;  %v772_v39 = vld [vmem:[#allocation6 + $0x58] sm:$0xff] (%p130_p4) }
  0xb1   : > { %1339 = vmatpush3.bf16.msra.mxu0 %v1338_v62  ;;  %v679_v62 = vld [vmem:[#allocation4 + $0x60] sm:$0xff] (%p130_p4) }
  0xb2   :  { %1340 = vmatprep.subr.bf16.mxu0 (%p130_p4), %v1599_v37 }
 0x167   : > { %v475_v63 = vpop.f32.mrb[0].mxu0 }
 0x168   : > { %v551_v0 = vadd.f32 %v475_v63, %v1749_v8  ;;  %v546_v1 = vpop.f32.mrb[0].mxu1  ;;  %v477_v21 = vpop.f32.mrb[1].mxu0  ;;  %v672_v8 = vld [vmem:[#allocation4 + $0x28] sm:$0xff] (%p130_p4) }
 0x169   : > { %v552_v2 = vadd.f32 %v477_v21, %v1751_v9  ;;  %v548_v3 = vpop.f32.mrb[1].mxu1  ;;  %v553_v15 = vadd.f32 %v546_v1, %v1753_v10  ;;  %v778_v9 = vld [vmem:[#allocation7] sm:$0xff] (%p130_p4)  ;;  %v779_v10 = vld [vmem:[#allocation7 + $0x8] sm:$0xff] (%p130_p4)  ;;  %v788_v1 = vld [vmem:[#allocation7 + $0x50] sm:$0xff] (%p130_p4) }
 0x16a   : > { %v975_v4 = vmul.f32 -1.442695, %v551_v0  ;;  %v554_v6 = vadd.f32 %v548_v3, %v1755_v11  ;;  %v1365_v11 = vpack.c.bf16 (%p130_p4), %v779_v10, %v778_v9  ;;  %v680_v63 = vld [vmem:[#allocation4 + $0x68] sm:$0xff] (%p130_p4)  ;;  %v1377_v0 = vpack.c.bf16 (%p130_p4), %v787_v60, %v786_v59  ;;  %v789_v21 = vld [vmem:[#allocation7 + $0x58] sm:$0xff] (%p130_p4)  ;;  %v681_v3 = vld [vmem:[#allocation4 + $0x70] sm:$0xff] (%p130_p4) }
 0x16b   : > { %v976_v5 = vmul.f32 -1.442695, %v552_v2  ;;  %v1359_v2 = vpack.c.bf16 (%p130_p4), %v680_v63, %v679_v62  ;;  %v775_v9 = vld [vmem:[#allocation6 + $0x70] sm:$0xff] (%p130_p4)  ;;  %v776_v10 = vld [vmem:[#allocation6 + $0x78] sm:$0xff] (%p130_p4) }
 0x16c   : > { %1454 = vpow2.f32 %v975_v4  ;;  %v977_v14 = vmul.f32 -1.442695, %v554_v6  ;;  %1366 = vmatpush3.bf16.msra.mxu1 (%p130_p4), %v1365_v11  ;;  %v682_v4 = vld [vmem:[#allocation4 + $0x78] sm:$0xff] (%p130_p4)  ;;  %v790_v6 = vld [vmem:[#allocation7 + $0x60] sm:$0xff] (%p130_p4)  ;;  %v1410_v11 = vpack.c.bf16 (%p130_p4), %v776_v10, %v775_v9 }
 0x16d   : > { %1456 = vpow2.f32 %v976_v5  ;;  %1367 = vmatprep.subr.bf16.mxu1 (%p130_p4), %v1599_v37  ;;  %v1380_v5 = vpack.c.bf16 (%p130_p4), %v789_v21, %v788_v1 }
 0x16e   : > { %1458 = vpow2.f32 %v977_v14  ;;  %v791_v14 = vld [vmem:[#allocation7 + $0x68] sm:$0xff] (%p130_p4) }
 0x16f   : > { %1460 = vtanh.f32 %v553_v15  ;;  %v1362_v15 = vpack.c.bf16 (%p130_p4), %v682_v4, %v681_v3 }
 0x176   : > { %v1455_v16 = vpop.eup %1454 }
 0x177   : > { %v1457_v17 = vpop.eup %1456  ;;  %v558_v18 = vadd.f32 1.0, %v1455_v16  ;;  %v761_v16 = vld [vmem:[#allocation6] sm:$0xff] (%p130_p4) }
 0x178   : > { %v564_v19 = vadd.f32 1.0, %v1457_v17  ;;  %v1459_v20 = vpop.eup %1458  ;;  %v762_v17 = vld [vmem:[#allocation6 + $0x8] sm:$0xff] (%p130_p4) }
 0x179   : > { %1462 = vrcp.f32 %v558_v18  ;;  %v1461_v22 = vpop.eup %1460  ;;  %v571_v26 = vadd.f32 1.0, %v1459_v20  ;;  %v1383_v18 = vpack.c.bf16 (%p130_p4), %v791_v14, %v790_v6  ;;  %v793_v20 = vld [vmem:[#allocation7 + $0x78] sm:$0xff] (%p130_p4) }
 0x17a   : > { %1464 = vrcp.f32 %v564_v19  ;;  %v792_v19 = vld [vmem:[#allocation7 + $0x70] sm:$0xff] (%p130_p4) }
 0x17b   : > { %1466 = vrcp.f32 %v571_v26 }
 0x183   : > { %v1463_v23 = vpop.eup %1462 }
 0x184   : > { %v1465_v24 = vpop.eup %1464  ;;  %v575_v25 = vmul.f32 %v1463_v23, %v1461_v22  ;;  %v1389_v22 = vpack.c.bf16 (%p130_p4), %v762_v17, %v761_v16  ;;  %v763_v23 = vld [vmem:[#allocation6 + $0x10] sm:$0xff] (%p130_p4) }
 0x185   : > { %v574_v27 = vmul.f32 %v1578_v12, %v1465_v24  ;;  %v1467_v29 = vpop.eup %1466  ;;  %v764_v24 = vld [vmem:[#allocation6 + $0x18] sm:$0xff] (%p130_p4) }
 0x186   :  { %v1392_v26 = vpack.c.bf16 (%p130_p4), %v764_v24, %v763_v23 }
 0x187   : > { %v2030_v12 = vadd.f32 %v575_v25, %v574_v27   ;;  %v1386_v25 = vpack.c.bf16 (%p130_p4), %v793_v20, %v792_v19  ;;  %v765_v27 = vld [vmem:[#allocation6 + $0x20] sm:$0xff] (%p130_p4) }
 0x189   : > { %v2116_v28 = vmov %v2030_v12 }
 0x18a   : > { %1468 = vtanh.f32 %v2116_v28  ;;  %v2118_v12 = vmov %v2116_v28 }
 0x18b   :  { %v780_v12 = vld [vmem:[#allocation7 + $0x10] sm:$0xff] (%p130_p4) }
 0x18c   :  { %v1368_v46 = vpack.c.bf16 (%p130_p4), %v781_v43, %v780_v12  ;;  %v978_v12 = vld [vmem:[%s2106_s8] ss:$0 sm:$0xff] (%p130_p4) }
 0x18e   :  { %1369 = vmatpush3.bf16.msra.mxu1 (%p130_p4), %v1368_v46 }
 0x18f   :  { %1370 = vmatprep.subr.bf16.mxu1 (%p130_p4), %v1599_v37 }
 0x192   :  { %1372 = vmatpush3.bf16.msra.mxu1 (%p130_p4), %v1371_v52 }
 0x193   :  { %1373 = vmatprep.subr.bf16.mxu1 (%p130_p4), %v1599_v37 }
 0x194   : > { %v1469_v30 = vpop.eup %1468 }
 0x195   : > { %v2033_v13 = vmul.f32 %v1469_v30, %v1467_v29   ;;  %v766_v29 = vld [vmem:[#allocation6 + $0x28] sm:$0xff] (%p130_p4)  ;;  %v777_v30 = vld [vmem:[%s2099_s1] sm:$0xff] (%p130_p4) }
 0x196   :  { %1375 = vmatpush3.bf16.msra.mxu1 (%p130_p4), %v1374_v58 }
 0x197   : > { %v2117_v31 = vmov %v2033_v13  ;;  %1376 = vmatprep.subr.bf16.mxu1 (%p130_p4), %v1599_v37 }
 0x198   : > { %1081 = vmatmul.mubr.f32.vlgmr.msra.gmra.mrb[2].mxu0 %v2117_v31  ;;  %v2119_v13 = vmov %v2117_v31 }
 0x199   :  { %v667_v13 = vld [vmem:[#allocation4] sm:$0xff] (%p130_p4)  ;;  %1115 = vmatprep.mubr.msk.f32.mxu0 (%p130_p4), %vm1600_vm1, %v1601_v40 }
 0x19a   :  { %v1341_v38 = vpack.c.bf16 (%p130_p4), %v668_v35, %v667_v13  ;;  %1378 = vmatpush3.bf16.msra.mxu1 (%p130_p4), %v1377_v0  ;;  %v769_v13 = vld [vmem:[#allocation6 + $0x40] sm:$0xff] (%p130_p4)  ;;  %v770_v35 = vld [vmem:[#allocation6 + $0x48] sm:$0xff] (%p130_p4) }
 0x19b   :  { %1379 = vmatprep.subr.bf16.mxu1 (%p130_p4), %v1599_v37  ;;  %v1401_v36 = vpack.c.bf16 (%p130_p4), %v770_v35, %v769_v13 }
 0x19c   :  { %1342 = vmatpush3.bf16.msra.mxu0 (%p130_p4), %v1341_v38  ;;  %v771_v38 = vld [vmem:[#allocation6 + $0x50] sm:$0xff] (%p130_p4) }
 0x19d   :  { %1343 = vmatprep.subr.bf16.mxu0 (%p130_p4), %v1599_v37 }
 0x19e   :  { %1381 = vmatpush3.bf16.msra.mxu1 (%p130_p4), %v1380_v5 }
 0x19f   :  { %1382 = vmatprep.subr.bf16.mxu1 (%p130_p4), %v1599_v37 }
 0x1a0   :  { %1345 = vmatpush3.bf16.msra.mxu0 (%p130_p4), %v1344_v41  ;;  %v773_v41 = vld [vmem:[#allocation6 + $0x60] sm:$0xff] (%p130_p4) }
 0x1a1   :  { %1346 = vmatprep.subr.bf16.mxu0 (%p130_p4), %v1599_v37 }
 0x1a2   :  { %1384 = vmatpush3.bf16.msra.mxu1 (%p130_p4), %v1383_v18 }
 0x1a3   :  { %1385 = vmatprep.subr.bf16.mxu1 (%p130_p4), %v1599_v37 }
 0x1a6   :  { %1387 = vmatpush3.bf16.msra.mxu1 (%p130_p4), %v1386_v25 }
 0x1a9   :  { %1151 = vmatmul.mubr.f32.vlgmr.msra.gmra.mrb[0].mxu1 (%p130_p4), %v777_v30 }
 0x268   :  { %132 = sbr.rel (!%p130_p4) target bundleno = 80 (0x50), region = 109 }
 0x26b   : > { %v661_v32 = vpop.f32.mrb[2].mxu0 }
 0x26c   : > { %v662_v33 = vadd.f32 %v1747_v7, %v661_v32  ;;  %v1082_v34 = vpop.f32.mrb[3].mxu0  ;;  %v671_v7 = vld [vmem:[#allocation4 + $0x20] sm:$0xff] (%p130_p4)  ;;  %v1395_v32 = vpack.c.bf16 (%p130_p4), %v766_v29, %v765_v27 }
 0x26d   :  { %v1347_v42 = vpack.c.bf16 (%p130_p4), %v672_v8, %v671_v7  ;;  %v774_v7 = vld [vmem:[#allocation6 + $0x68] sm:$0xff] (%p130_p4) }
 0x26e   : > { %666 = vst [vmem:[%s665_s3] sm:$0xff] %v662_v33  ;;  %v768_v33 = vld [vmem:[#allocation6 + $0x38] sm:$0xff] (%p130_p4)  ;;  %v1407_v8 = vpack.c.bf16 (%p130_p4), %v774_v7, %v773_v41 }
 0x26f   :  { %1348 = vmatpush3.bf16.msra.mxu0 %v1347_v42 }
 0x270   :  { %1349 = vmatprep.subr.bf16.mxu0 %v1599_v37 }
 0x273   :  { %1351 = vmatpush3.bf16.msra.mxu0 %v1350_v49 }
 0x274   :  { %1352 = vmatprep.subr.bf16.mxu0 %v1599_v37 }
 0x277   :  { %1354 = vmatpush3.bf16.msra.mxu0 %v1353_v55 }
 0x278   :  { %1355 = vmatprep.subr.bf16.mxu0 %v1599_v37 }
 0x27b   :  { %1357 = vmatpush3.bf16.msra.mxu0 %v1356_v61 }
 0x27c   :  { %1358 = vmatprep.subr.bf16.mxu0 %v1599_v37  ;;  %v860_v45 = vpop.f32.mrb[0].mxu1 }
 0x27d   :  { %v1152_v46 = vpop.f32.mrb[1].mxu1 }
 0x27f   :  { %1360 = vmatpush3.bf16.msra.mxu0 %v1359_v2 }
 0x280   :  { %1361 = vmatprep.subr.bf16.mxu0 %v1599_v37 }
 0x283   :  { %1363 = vmatpush3.bf16.msra.mxu0 %v1362_v15 }
 0x284   :  { %1388 = vmatprep.subr.bf16.mxu0 %v1599_v37 }
 0x286   :  { %1116 = vmatmul.mubr.f32.vlgmr.msra.gmra.mrb[0].mxu0 %v2116_v28  ;;  %v767_v28 = vld [vmem:[#allocation6 + $0x30] sm:$0xff] }
 0x287   :  { %1390 = vmatpush3.bf16.msra.mxu0 %v1389_v22  ;;  %1185 = vmatprep.mubr.msk.f32.mxu0 %vm1600_vm1, %v1601_v40  ;;  %v1398_v34 = vpack.c.bf16 %v768_v33, %v767_v28  ;;  %v1404_v40 = vpack.c.bf16 %v772_v39, %v771_v38 }
 0x288   :  { %1391 = vmatprep.subr.bf16.mxu0 %v1599_v37 }
 0x28b   :  { %1393 = vmatpush3.bf16.msra.mxu0 %v1392_v26 }
 0x28c   :  { %1394 = vmatprep.subr.bf16.mxu0 %v1599_v37 }
 0x28f   :  { %1396 = vmatpush3.bf16.msra.mxu0 %v1395_v32 }
 0x290   :  { %1397 = vmatprep.subr.bf16.mxu0 %v1599_v37 }
 0x293   :  { %1399 = vmatpush3.bf16.msra.mxu0 %v1398_v34 }
 0x294   :  { %1400 = vmatprep.subr.bf16.mxu0 %v1599_v37 }
 0x297   :  { %1402 = vmatpush3.bf16.msra.mxu0 %v1401_v36 }
 0x298   :  { %1403 = vmatprep.subr.bf16.mxu0 %v1599_v37 }
 0x29b   :  { %1405 = vmatpush3.bf16.msra.mxu0 %v1404_v40 }
 0x29c   :  { %1406 = vmatprep.subr.bf16.mxu0 %v1599_v37 }
 0x29f   :  { %1408 = vmatpush3.bf16.msra.mxu0 %v1407_v8 }
 0x2a0   :  { %1409 = vmatprep.subr.bf16.mxu0 %v1599_v37  ;;  %v979_v37 = vld [vmem:[%s2109_s11] ss:$0 sm:$0xff] }
 0x2a3   :  { %1411 = vmatpush3.bf16.msra.mxu0 %v1410_v11 }
 0x2a6   :  { %1186 = vmatmul.mubr.f32.vlgmr.msra.gmra.mrb[2].mxu0 %v2117_v31 }
 0x359   :  { %v756_v42 = vpop.f32.mrb[0].mxu0 }
 0x35a   :  { %v757_v43 = vadd.f32 %v978_v12, %v756_v42  ;;  %v1117_v44 = vpop.f32.mrb[1].mxu0 }
 0x35c   :  { %760 = vst [vmem:[%s2112_s14] sm:$0xff] %v757_v43 }
 0x379   :  { %v930_v47 = vpop.f32.mrb[2].mxu0 }
 0x37a   :  { %v931_v48 = vadd.f32 %v930_v47, %v860_v45  ;;  %v1187_v31 = vpop.f32.mrb[3].mxu0 }
 0x37c   :  { %v941_v49 = vadd.f32 %v979_v37, %v931_v48 }
 0x37e   :  { %942 = vst [vmem:[%s2111_s13] sm:$0xff] %v941_v49 }
 0x37f   :  { %955 = vsyncpa [#allocation3], 1 }
 0x380   :  { %956 = vsyncpa [#allocation5], 1 }
 0x381   :  { %957 = vsyncpa [#allocation8], 1 }

// kernel: seq_model_forward.4
= control target key start
LH: loop header
LB: loop body
LE: loop exit
PB: predicated region body
PF: predicated region fallthrough
CT: control target
= control target key end

     0   :  { %v52_v0 = vlaneseq  ;;  %v2616_v4 = vmov 1966171168   ;;  %s3439_s0 = inlined_call_operand.vmem [shape: f32[8,8,128], index: 0, kind: input, shape index: {}]   ;;  %s3440_s3 = inlined_call_operand.vmem [shape: f32[8,8,128], index: 3, kind: input, shape index: {}]   ;;  %s3441_s4 = inlined_call_operand.vmem [shape: f32[8,8], index: 4, kind: input, shape index: {}]   ;;  %s3442_s5 = inlined_call_operand.vmem [shape: f32[128,512], index: 5, kind: input, shape index: {}]   ;;  %s3443_s6 = inlined_call_operand.vmem [shape: f32[128,512], index: 6, kind: input, shape index: {}]   ;;  %s3444_s8 = inlined_call_operand.vmem [shape: f32[128,128], index: 8, kind: input, shape index: {}]   ;;  %s3445_s9 = inlined_call_operand.vmem [shape: f32[128,128], index: 9, kind: input, shape index: {}]   ;;  %s3446_s11 = inlined_call_operand.vmem [shape: f32[8,8,128], index: 11, kind: output, shape index: {}]   ;;  %s3447_s1 = inlined_call_operand.vmem [shape: f32[8,128], index: 1, kind: input, shape index: {}]   ;;  %s3448_s7 = inlined_call_operand.vmem [shape: f32[1,512], index: 7, kind: input, shape index: {}]   ;;  %s3449_s2 = inlined_call_operand.vmem [shape: f32[8,128], index: 2, kind: input, shape index: {}]   ;;  %s3450_s10 = inlined_call_operand.vmem [shape: f32[1,128], index: 10, kind: input, shape index: {}]  }
   0x1   :  { %v2683_v1 = vld [vmem:[%s3440_s3] sm:$0xff]  ;;  %v2688_v2 = vld [vmem:[%s3440_s3 + $0x8] sm:$0xff]  ;;  %v2693_v3 = vld [vmem:[%s3440_s3 + $0x10] sm:$0xff]  ;;  %v50_v5 = vunpack.c.l.s4 %v2616_v4 }
   0x2   :  { %v2698_v6 = vld [vmem:[%s3440_s3 + $0x18] sm:$0xff]  ;;  %v2703_v7 = vld [vmem:[%s3440_s3 + $0x20] sm:$0xff]  ;;  %v2708_v8 = vld [vmem:[%s3440_s3 + $0x28] sm:$0xff]  ;;  %v53_v9 = vshrl.u32 %v52_v0, 7 }
   0x3   :  { %v2713_v10 = vld [vmem:[%s3440_s3 + $0x30] sm:$0xff]  ;;  %v2718_v11 = vld [vmem:[%s3440_s3 + $0x38] sm:$0xff]  ;;  %v46_v12 = vld [vmem:[%s3441_s4] sm:$0xff]  ;;  %v51_v13 = vunpack.c.0.s8 %v50_v5 }
   0x4   :  { %v48_v14 = vcombine.high %v46_v12, %v46_v12  ;;  %v105_v15 = vld [vmem:[%s3448_s7] sm:$0xf]  ;;  %v109_v16 = vsub.s32 0, %v53_v9  ;;  %v113_v17 = vsub.s32 1, %v53_v9  ;;  %v117_v18 = vsub.s32 2, %v53_v9 }
   0x5   :  { %v134_v19 = vld [vmem:[%s3447_s1] sm:$0xff]   ;;  %v2729_v20 = vsub.s32 %v51_v13, %v53_v9  ;;  %v121_v21 = vsub.s32 3, %v53_v9  ;;  %s2773_s1 = smov 0  }
   0x6   :  { %v2734_v22 = vld [vmem:[%s3450_s10] ss:$0 sm:$0xff]  ;;  %v2739_v24 = vrot.slane %v105_v15, %v109_v16  ;;  %v2741_v25 = vrot.slane %v105_v15, %v113_v17  ;;  %v2743_v26 = vrot.slane %v105_v15, %v117_v18 }
   0x7   :  { %v135_v23 = vld [vmem:[%s3449_s2] sm:$0xff]   ;;  %v55_v27 = vrot.slane %v46_v12, %v2729_v20  ;;  %v62_v28 = vrot.slane %v48_v14, %v2729_v20  ;;  %v2747_v29 = vrot.slane %v105_v15, %v121_v21 }
   0x9   :  { %v63_v30 = vcombine.high %v55_v27, %v55_v27  ;;  %v64_v31 = vcombine.high %v62_v28, %v62_v28  ;;  %v2750_v32 = vrot.slane %v55_v27, %v2729_v20  ;;  %v2753_v33 = vrot.slane %v62_v28, %v2729_v20 }
   0xb   :  { %v2756_v34 = vrot.slane %v63_v30, %v2729_v20  ;;  %v2759_v35 = vrot.slane %v64_v31, %v2729_v20  ;;  %v93_v36 = vcombine.high %v2750_v32, %v2750_v32  ;;  %v94_v37 = vcombine.high %v2753_v33, %v2753_v33 }
   0xd   :  { %v95_v38 = vcombine.high %v2756_v34, %v2756_v34  ;;  %v96_v39 = vcombine.high %v2759_v35, %v2759_v35 }
   0xe LB: > { %v212_v40 = vld [vmem:[%s3443_s6 + $0x8] sm:$0xff]  ;;  %v214_v42 = vld [vmem:[%s3443_s6 + $0x18] sm:$0xff]  ;;  %v211_v45 = vld [vmem:[%s3443_s6] sm:$0xff]  ;;  %v2617_v47 = vmov 0.0   ;;  %s2105_s16 = sshll.u32 %s2614_s1, 3  ;;  %vm2618_vm0 = vmmov 0   ;;  %s2614_s1 = sphi %s2773_s1, %s141_s1   ;;  %v2610_v19 = vphi %v134_v19, %v3198_v19   ;;  %v2606_v23 = vphi %v135_v23, %v3195_v23  }
   0xf   : > { %v216_v41 = vld [vmem:[%s3443_s6 + $0x28] sm:$0xff]  ;;  %v218_v44 = vld [vmem:[%s3443_s6 + $0x38] sm:$0xff]  ;;  %v215_v46 = vld [vmem:[%s3443_s6 + $0x20] sm:$0xff]  ;;  %339 = vmatprep.mubr.f32.mxu0 %v2617_v47  ;;  %410 = vmatprep.mubr.f32.mxu1 %v2617_v47  ;;  %s145_s19 = scalar_lea.vmem %s3439_s0, %s2105_s16  ;;  %vm1205_vm1 = vcmask 57344   ;;  %vm1294_vm2 = vcmask 64512   ;;  %vm1990_vm3 = vcmask 1041409   ;;  %s2083_s17 = scalar_lea.vmem %s3446_s11, %s2105_s16 }
  0x10   : > { %v2333_v43 = vpack.c.bf16 %v216_v41, %v212_v40  ;;  %v2365_v48 = vpack.c.bf16 %v218_v44, %v214_v42  ;;  %v2335_v49 = vpack.c.bf16 %v215_v46, %v211_v45  ;;  %v213_v50 = vld [vmem:[%s3443_s6 + $0x10] sm:$0xff]  ;;  %v220_v52 = vld [vmem:[%s3443_s6 + $0x48] sm:$0xff]  ;;  %v222_v55 = vld [vmem:[%s3443_s6 + $0x58] sm:$0xff]  ;;  %vm1993_vm4 = vcmask 1042434   ;;  %s141_s1 = sadd.s32 1, %s2614_s1  }
  0x11   : > { %v217_v51 = vld [vmem:[%s3443_s6 + $0x30] sm:$0xff]  ;;  %v224_v54 = vld [vmem:[%s3443_s6 + $0x68] sm:$0xff]  ;;  %v226_v56 = vld [vmem:[%s3443_s6 + $0x78] sm:$0xff]  ;;  %vm1996_vm5 = vcmask 1043459   ;;  %vm1999_vm6 = vcmask 1044484   ;;  %vm2002_vm7 = vcmask 1045509  }
  0x12   : > { %2334 = vmatprep.subr.bf16.mxu0 %v2333_v43  ;;  %v2367_v53 = vpack.c.bf16 %v217_v51, %v213_v50  ;;  %2366 = vmatprep.subr.bf16.mxu1 %v2365_v48  ;;  %v2337_v57 = vpack.c.bf16 %v224_v54, %v220_v52  ;;  %v2369_v58 = vpack.c.bf16 %v226_v56, %v222_v55  ;;  %v219_v59 = vld [vmem:[%s3443_s6 + $0x40] sm:$0xff]  ;;  %v221_v61 = vld [vmem:[%s3443_s6 + $0x50] sm:$0xff]  ;;  %v228_v0 = vld [vmem:[%s3443_s6 + $0x88] sm:$0xff]  ;;  %vm2005_vm8 = vcmask 1046534   ;;  %p138_p0 = scmp.ge.s32.totalorder %s141_s1, 8  }
  0x13   : > { %2336 = vmatpush1.bf16.msra.mxu0 %v2335_v49  ;;  %v223_v60 = vld [vmem:[%s3443_s6 + $0x60] sm:$0xff]  ;;  %v225_v63 = vld [vmem:[%s3443_s6 + $0x70] sm:$0xff]  ;;  %v232_v4 = vld [vmem:[%s3443_s6 + $0xa8] sm:$0xff]  ;;  %vm2008_vm9 = vcmask 1047559  }
  0x14   : > { %2368 = vmatpush1.bf16.msra.mxu1 %v2367_v53  ;;  %v2339_v62 = vpack.c.bf16 %v223_v60, %v219_v59  ;;  %2338 = vmatprep.subr.bf16.mxu0 %v2337_v57  ;;  %v2371_v5 = vpack.c.bf16 %v225_v63, %v221_v61  ;;  %v2341_v9 = vpack.c.bf16 %v232_v4, %v228_v0  ;;  %v230_v12 = vld [vmem:[%s3443_s6 + $0x98] sm:$0xff]  ;;  %v227_v14 = vld [vmem:[%s3443_s6 + $0x80] sm:$0xff]  ;;  %v229_v17 = vld [vmem:[%s3443_s6 + $0x90] sm:$0xff] }
  0x15   : > { %2370 = vmatprep.subr.bf16.mxu1 %v2369_v58  ;;  %v234_v13 = vld [vmem:[%s3443_s6 + $0xb8] sm:$0xff]  ;;  %v231_v16 = vld [vmem:[%s3443_s6 + $0xa0] sm:$0xff]  ;;  %v233_v18 = vld [vmem:[%s3443_s6 + $0xb0] sm:$0xff] }
  0x16   : > { %v2373_v15 = vpack.c.bf16 %v234_v13, %v230_v12  ;;  %v2343_v21 = vpack.c.bf16 %v231_v16, %v227_v14  ;;  %v236_v27 = vld [vmem:[%s3443_s6 + $0xc8] sm:$0xff]  ;;  %v238_v30 = vld [vmem:[%s3443_s6 + $0xd8] sm:$0xff]  ;;  %v2375_v31 = vpack.c.bf16 %v233_v18, %v229_v17  ;;  %v235_v42 = vld [vmem:[%s3443_s6 + $0xc0] sm:$0xff] }
  0x17   : > { %2340 = vmatpush1.bf16.msra.mxu0 %v2339_v62  ;;  %v240_v28 = vld [vmem:[%s3443_s6 + $0xe8] sm:$0xff]  ;;  %v242_v41 = vld [vmem:[%s3443_s6 + $0xf8] sm:$0xff]  ;;  %v239_v43 = vld [vmem:[%s3443_s6 + $0xe0] sm:$0xff] }
  0x18   : > { %2372 = vmatpush1.bf16.msra.mxu1 %v2371_v5  ;;  %2342 = vmatprep.subr.bf16.mxu0 %v2341_v9  ;;  %v2345_v40 = vpack.c.bf16 %v240_v28, %v236_v27  ;;  %v2377_v44 = vpack.c.bf16 %v242_v41, %v238_v30  ;;  %v237_v45 = vld [vmem:[%s3443_s6 + $0xd0] sm:$0xff]  ;;  %v244_v48 = vld [vmem:[%s3443_s6 + $0x108] sm:$0xff]  ;;  %v246_v50 = vld [vmem:[%s3443_s6 + $0x118] sm:$0xff]  ;;  %v2347_v52 = vpack.c.bf16 %v239_v43, %v235_v42 }
  0x19   : > { %2374 = vmatprep.subr.bf16.mxu1 %v2373_v15  ;;  %v241_v46 = vld [vmem:[%s3443_s6 + $0xf0] sm:$0xff]  ;;  %v248_v49 = vld [vmem:[%s3443_s6 + $0x128] sm:$0xff]  ;;  %v250_v51 = vld [vmem:[%s3443_s6 + $0x138] sm:$0xff] }
  0x1a   : > { %v2379_v53 = vpack.c.bf16 %v241_v46, %v237_v45  ;;  %v2349_v54 = vpack.c.bf16 %v248_v49, %v244_v48  ;;  %v243_v55 = vld [vmem:[%s3443_s6 + $0x100] sm:$0xff]  ;;  %v245_v57 = vld [vmem:[%s3443_s6 + $0x110] sm:$0xff]  ;;  %v2381_v58 = vpack.c.bf16 %v250_v51, %v246_v50  ;;  %v252_v60 = vld [vmem:[%s3443_s6 + $0x148] sm:$0xff] }
  0x1b   : > { %2344 = vmatpush1.bf16.msra.mxu0 %v2343_v21  ;;  %v247_v56 = vld [vmem:[%s3443_s6 + $0x120] sm:$0xff]  ;;  %v249_v59 = vld [vmem:[%s3443_s6 + $0x130] sm:$0xff]  ;;  %v256_v61 = vld [vmem:[%s3443_s6 + $0x168] sm:$0xff] }
  0x1c   : > { %2376 = vmatpush1.bf16.msra.mxu1 %v2375_v31  ;;  %2346 = vmatprep.subr.bf16.mxu0 %v2345_v40  ;;  %v254_v62 = vld [vmem:[%s3443_s6 + $0x158] sm:$0xff]  ;;  %v2351_v0 = vpack.c.bf16 %v247_v56, %v243_v55  ;;  %v2383_v4 = vpack.c.bf16 %v249_v59, %v245_v57  ;;  %v2353_v5 = vpack.c.bf16 %v256_v61, %v252_v60  ;;  %v251_v9 = vld [vmem:[%s3443_s6 + $0x140] sm:$0xff]  ;;  %v253_v13 = vld [vmem:[%s3443_s6 + $0x150] sm:$0xff] }
  0x1d   : > { %2378 = vmatprep.subr.bf16.mxu1 %v2377_v44  ;;  %v258_v63 = vld [vmem:[%s3443_s6 + $0x178] sm:$0xff]  ;;  %v255_v12 = vld [vmem:[%s3443_s6 + $0x160] sm:$0xff]  ;;  %v257_v15 = vld [vmem:[%s3443_s6 + $0x170] sm:$0xff] }
  0x1e   : > { %v2385_v14 = vpack.c.bf16 %v258_v63, %v254_v62  ;;  %v260_v16 = vld [vmem:[%s3443_s6 + $0x188] sm:$0xff]  ;;  %v262_v18 = vld [vmem:[%s3443_s6 + $0x198] sm:$0xff]  ;;  %v2355_v27 = vpack.c.bf16 %v255_v12, %v251_v9  ;;  %v2387_v28 = vpack.c.bf16 %v257_v15, %v253_v13  ;;  %v259_v31 = vld [vmem:[%s3443_s6 + $0x180] sm:$0xff] }
  0x1f   : > { %2348 = vmatpush1.bf16.msra.mxu0 %v2347_v52  ;;  %v264_v17 = vld [vmem:[%s3443_s6 + $0x1a8] sm:$0xff]  ;;  %v266_v21 = vld [vmem:[%s3443_s6 + $0x1b8] sm:$0xff]  ;;  %v263_v40 = vld [vmem:[%s3443_s6 + $0x1a0] sm:$0xff] }
  0x20   : > { %2380 = vmatpush1.bf16.msra.mxu1 %v2379_v53  ;;  %2350 = vmatprep.subr.bf16.mxu0 %v2349_v54  ;;  %v2357_v30 = vpack.c.bf16 %v264_v17, %v260_v16  ;;  %v261_v41 = vld [vmem:[%s3443_s6 + $0x190] sm:$0xff]  ;;  %v2389_v42 = vpack.c.bf16 %v266_v21, %v262_v18  ;;  %v268_v44 = vld [vmem:[%s3443_s6 + $0x1c8] sm:$0xff]  ;;  %v270_v46 = vld [vmem:[%s3443_s6 + $0x1d8] sm:$0xff]  ;;  %v2359_v49 = vpack.c.bf16 %v263_v40, %v259_v31 }
  0x21   : > { %2382 = vmatprep.subr.bf16.mxu1 %v2381_v58  ;;  %v265_v43 = vld [vmem:[%s3443_s6 + $0x1b0] sm:$0xff]  ;;  %v272_v45 = vld [vmem:[%s3443_s6 + $0x1e8] sm:$0xff]  ;;  %v274_v48 = vld [vmem:[%s3443_s6 + $0x1f8] sm:$0xff] }
  0x22   : > { %v2391_v50 = vpack.c.bf16 %v265_v43, %v261_v41  ;;  %v2361_v51 = vpack.c.bf16 %v272_v45, %v268_v44  ;;  %v267_v52 = vld [vmem:[%s3443_s6 + $0x1c0] sm:$0xff]  ;;  %v269_v54 = vld [vmem:[%s3443_s6 + $0x1d0] sm:$0xff]  ;;  %v2393_v55 = vpack.c.bf16 %v274_v48, %v270_v46  ;;  %v148_v57 = vld [vmem:[%s3442_s5 + $0x8] sm:$0xff] }
  0x23   : > { %2352 = vmatpush1.bf16.msra.mxu0 %v2351_v0  ;;  %v271_v53 = vld [vmem:[%s3443_s6 + $0x1e0] sm:$0xff]  ;;  %v273_v56 = vld [vmem:[%s3443_s6 + $0x1f0] sm:$0xff]  ;;  %v152_v58 = vld [vmem:[%s3442_s5 + $0x28] sm:$0xff] }
  0x24   : > { %2384 = vmatpush1.bf16.msra.mxu1 %v2383_v4  ;;  %2354 = vmatprep.subr.bf16.mxu0 %v2353_v5  ;;  %v150_v59 = vld [vmem:[%s3442_s5 + $0x18] sm:$0xff]  ;;  %v2363_v61 = vpack.c.bf16 %v271_v53, %v267_v52  ;;  %v2395_v62 = vpack.c.bf16 %v273_v56, %v269_v54  ;;  %v2397_v63 = vpack.c.bf16 %v152_v58, %v148_v57  ;;  %v147_v0 = vld [vmem:[%s3442_s5] sm:$0xff]  ;;  %v149_v5 = vld [vmem:[%s3442_s5 + $0x10] sm:$0xff] }
  0x25   : > { %2386 = vmatprep.subr.bf16.mxu1 %v2385_v14  ;;  %v154_v60 = vld [vmem:[%s3442_s5 + $0x38] sm:$0xff]  ;;  %v151_v4 = vld [vmem:[%s3442_s5 + $0x20] sm:$0xff]  ;;  %v153_v12 = vld [vmem:[%s3442_s5 + $0x30] sm:$0xff] }
  0x26   : > { %v2429_v9 = vpack.c.bf16 %v154_v60, %v150_v59  ;;  %v156_v13 = vld [vmem:[%s3442_s5 + $0x48] sm:$0xff]  ;;  %v158_v15 = vld [vmem:[%s3442_s5 + $0x58] sm:$0xff]  ;;  %v2399_v17 = vpack.c.bf16 %v151_v4, %v147_v0  ;;  %v2431_v18 = vpack.c.bf16 %v153_v12, %v149_v5  ;;  %v161_v40 = vld [vmem:[%s3442_s5 + $0x70] sm:$0xff] }
  0x27   : > { %2356 = vmatpush1.bf16.msra.mxu0 %v2355_v27  ;;  %v160_v14 = vld [vmem:[%s3442_s5 + $0x68] sm:$0xff]  ;;  %v162_v16 = vld [vmem:[%s3442_s5 + $0x78] sm:$0xff]  ;;  %v155_v27 = vld [vmem:[%s3442_s5 + $0x40] sm:$0xff] }
  0x28   : > { %2388 = vmatpush1.bf16.msra.mxu1 %v2387_v28  ;;  %2358 = vmatprep.subr.bf16.mxu0 %v2357_v30  ;;  %v2401_v21 = vpack.c.bf16 %v160_v14, %v156_v13  ;;  %v159_v28 = vld [vmem:[%s3442_s5 + $0x60] sm:$0xff]  ;;  %v157_v30 = vld [vmem:[%s3442_s5 + $0x50] sm:$0xff]  ;;  %v2433_v31 = vpack.c.bf16 %v162_v16, %v158_v15  ;;  %v164_v41 = vld [vmem:[%s3442_s5 + $0x88] sm:$0xff] }
  0x29   : > { %2390 = vmatprep.subr.bf16.mxu1 %v2389_v42  ;;  %v168_v42 = vld [vmem:[%s3442_s5 + $0xa8] sm:$0xff]  ;;  %v166_v43 = vld [vmem:[%s3442_s5 + $0x98] sm:$0xff]  ;;  %v2403_v45 = vpack.c.bf16 %v159_v28, %v155_v27  ;;  %v2435_v46 = vpack.c.bf16 %v161_v40, %v157_v30  ;;  %v169_v52 = vld [vmem:[%s3442_s5 + $0xb0] sm:$0xff] }
  0x2a   : > { %v170_v44 = vld [vmem:[%s3442_s5 + $0xb8] sm:$0xff]  ;;  %v2405_v48 = vpack.c.bf16 %v168_v42, %v164_v41  ;;  %v172_v53 = vld [vmem:[%s3442_s5 + $0xc8] sm:$0xff]  ;;  %v171_v60 = vld [vmem:[%s3442_s5 + $0xc0] sm:$0xff] }
  0x2b   : > { %2360 = vmatpush1.bf16.msra.mxu0 %v2359_v49  ;;  %v163_v49 = vld [vmem:[%s3442_s5 + $0x80] sm:$0xff]  ;;  %v176_v54 = vld [vmem:[%s3442_s5 + $0xe8] sm:$0xff]  ;;  %v178_v56 = vld [vmem:[%s3442_s5 + $0xf8] sm:$0xff] }
  0x2c   : > { %2392 = vmatpush1.bf16.msra.mxu1 %v2391_v50  ;;  %2362 = vmatprep.subr.bf16.mxu0 %v2361_v51  ;;  %v167_v50 = vld [vmem:[%s3442_s5 + $0xa0] sm:$0xff]  ;;  %v165_v51 = vld [vmem:[%s3442_s5 + $0x90] sm:$0xff]  ;;  %v2409_v59 = vpack.c.bf16 %v176_v54, %v172_v53  ;;  %v180_v4 = vld [vmem:[%s3442_s5 + $0x108] sm:$0xff] }
  0x2d   : > { %2394 = vmatprep.subr.bf16.mxu1 %v2393_v55  ;;  %v174_v55 = vld [vmem:[%s3442_s5 + $0xd8] sm:$0xff]  ;;  %v2407_v57 = vpack.c.bf16 %v167_v50, %v163_v49  ;;  %v2439_v58 = vpack.c.bf16 %v169_v52, %v165_v51  ;;  %v177_v0 = vld [vmem:[%s3442_s5 + $0xf0] sm:$0xff]  ;;  %v184_v5 = vld [vmem:[%s3442_s5 + $0x128] sm:$0xff] }
  0x2e   : > { %v186_v12 = vld [vmem:[%s3442_s5 + $0x138] sm:$0xff]  ;;  %v2413_v15 = vpack.c.bf16 %v184_v5, %v180_v4  ;;  %v179_v16 = vld [vmem:[%s3442_s5 + $0x100] sm:$0xff]  ;;  %v185_v27 = vld [vmem:[%s3442_s5 + $0x130] sm:$0xff] }
  0x2f   : > { %2364 = vmatpush1.bf16.msra.mxu0 %v2363_v61  ;;  %v175_v61 = vld [vmem:[%s3442_s5 + $0xe0] sm:$0xff]  ;;  %v188_v28 = vld [vmem:[%s3442_s5 + $0x148] sm:$0xff]  ;;  %v194_v40 = vld [vmem:[%s3442_s5 + $0x178] sm:$0xff] }
  0x30   : > { %2396 = vmatpush1.bf16.msra.mxu1 %v2395_v62  ;;  %2398 = vmatprep.subr.bf16.mxu0 %v2397_v63  ;;  %v173_v62 = vld [vmem:[%s3442_s5 + $0xd0] sm:$0xff]  ;;  %v2441_v63 = vpack.c.bf16 %v178_v56, %v174_v55  ;;  %v2411_v13 = vpack.c.bf16 %v175_v61, %v171_v60  ;;  %v192_v30 = vld [vmem:[%s3442_s5 + $0x168] sm:$0xff]  ;;  %v202_v52 = vld [vmem:[%s3442_s5 + $0x1b8] sm:$0xff] }
  0x31   : > { %2430 = vmatprep.subr.bf16.mxu1 %v2429_v9  ;;  %v182_v9 = vld [vmem:[%s3442_s5 + $0x118] sm:$0xff]  ;;  %v2443_v14 = vpack.c.bf16 %v177_v0, %v173_v62  ;;  %v193_v49 = vld [vmem:[%s3442_s5 + $0x170] sm:$0xff]  ;;  %v196_v50 = vld [vmem:[%s3442_s5 + $0x188] sm:$0xff] }
  0x32   : > { %340 = vmatmul.mubr.f32.vlgmr.msra.gmra.mrb[0].mxu0 %v2610_v19  ;;  %v200_v51 = vld [vmem:[%s3442_s5 + $0x1a8] sm:$0xff]  ;;  %v195_v56 = vld [vmem:[%s3442_s5 + $0x180] sm:$0xff]  ;;  %v201_v60 = vld [vmem:[%s3442_s5 + $0x1b0] sm:$0xff] }
  0x33   : > { %411 = vmatmul.mubr.f32.vlgmr.msra.gmra.mrb[0].mxu1 %v2610_v19  ;;  %2400 = vmatpush1.bf16.msra.mxu0 %v2399_v17  ;;  %v2437_v19 = vpack.c.bf16 %v170_v44, %v166_v43  ;;  %v183_v17 = vld [vmem:[%s3442_s5 + $0x120] sm:$0xff]  ;;  %v2417_v43 = vpack.c.bf16 %v192_v30, %v188_v28  ;;  %v2421_v55 = vpack.c.bf16 %v200_v51, %v196_v50  ;;  %v204_v61 = vld [vmem:[%s3442_s5 + $0x1c8] sm:$0xff]  ;;  %v210_v0 = vld [vmem:[%s3442_s5 + $0x1f8] sm:$0xff] }
  0x34   : > { %2432 = vmatpush1.bf16.msra.mxu1 %v2431_v18  ;;  %2402 = vmatprep.subr.bf16.mxu0 %v2401_v21  ;;  %v181_v18 = vld [vmem:[%s3442_s5 + $0x110] sm:$0xff]  ;;  %v2445_v21 = vpack.c.bf16 %v186_v12, %v182_v9  ;;  %v2415_v41 = vpack.c.bf16 %v183_v17, %v179_v16  ;;  %v187_v44 = vld [vmem:[%s3442_s5 + $0x140] sm:$0xff]  ;;  %v208_v62 = vld [vmem:[%s3442_s5 + $0x1e8] sm:$0xff] }
  0x35   : > { %2434 = vmatprep.subr.bf16.mxu1 %v2433_v31  ;;  %481 = vmatprep.mubr.f32.mxu0 %v2617_v47  ;;  %v190_v31 = vld [vmem:[%s3442_s5 + $0x158] sm:$0xff]  ;;  %v2447_v42 = vpack.c.bf16 %v185_v27, %v181_v18  ;;  %v2425_v9 = vpack.c.bf16 %v208_v62, %v204_v61  ;;  %v203_v12 = vld [vmem:[%s3442_s5 + $0x1c0] sm:$0xff]  ;;  %v209_v16 = vld [vmem:[%s3442_s5 + $0x1f0] sm:$0xff] }
  0x36   : > { %552 = vmatprep.mubr.f32.mxu1 %v2617_v47 }
  0x37   : > { %2404 = vmatpush1.bf16.msra.mxu0 %v2403_v45  ;;  %v191_v45 = vld [vmem:[%s3442_s5 + $0x160] sm:$0xff] }
  0x38   : > { %2436 = vmatpush1.bf16.msra.mxu1 %v2435_v46  ;;  %2406 = vmatprep.subr.bf16.mxu0 %v2405_v48  ;;  %v189_v46 = vld [vmem:[%s3442_s5 + $0x150] sm:$0xff]  ;;  %v2449_v48 = vpack.c.bf16 %v194_v40, %v190_v31  ;;  %v2419_v53 = vpack.c.bf16 %v191_v45, %v187_v44 }
  0x39   : > { %2438 = vmatprep.subr.bf16.mxu1 %v2437_v19  ;;  %v198_v19 = vld [vmem:[%s3442_s5 + $0x198] sm:$0xff]  ;;  %v2451_v54 = vpack.c.bf16 %v193_v49, %v189_v46 }
  0x3b   : > { %2408 = vmatpush1.bf16.msra.mxu0 %v2407_v57  ;;  %v199_v57 = vld [vmem:[%s3442_s5 + $0x1a0] sm:$0xff] }
  0x3c   : > { %2440 = vmatpush1.bf16.msra.mxu1 %v2439_v58  ;;  %2410 = vmatprep.subr.bf16.mxu0 %v2409_v59  ;;  %v197_v58 = vld [vmem:[%s3442_s5 + $0x190] sm:$0xff]  ;;  %v2453_v59 = vpack.c.bf16 %v202_v52, %v198_v19  ;;  %v2423_v4 = vpack.c.bf16 %v199_v57, %v195_v56 }
  0x3d   : > { %2442 = vmatprep.subr.bf16.mxu1 %v2441_v63  ;;  %v206_v63 = vld [vmem:[%s3442_s5 + $0x1d8] sm:$0xff]  ;;  %v2455_v5 = vpack.c.bf16 %v201_v60, %v197_v58 }
  0x3f   : > { %2412 = vmatpush1.bf16.msra.mxu0 %v2411_v13  ;;  %v207_v13 = vld [vmem:[%s3442_s5 + $0x1e0] sm:$0xff] }
  0x40   : > { %2444 = vmatpush1.bf16.msra.mxu1 %v2443_v14  ;;  %2414 = vmatprep.subr.bf16.mxu0 %v2413_v15  ;;  %v2457_v14 = vpack.c.bf16 %v210_v0, %v206_v63  ;;  %v205_v15 = vld [vmem:[%s3442_s5 + $0x1d0] sm:$0xff]  ;;  %v2427_v17 = vpack.c.bf16 %v207_v13, %v203_v12 }
  0x41   : > { %2446 = vmatprep.subr.bf16.mxu1 %v2445_v21  ;;  %v2459_v18 = vpack.c.bf16 %v209_v16, %v205_v15  ;;  %v146_v21 = vld [vmem:[%s145_s19] sm:$0xff] }
  0x43   : > { %2416 = vmatpush1.bf16.msra.mxu0 %v2415_v41 }
  0x44   : > { %2448 = vmatpush1.bf16.msra.mxu1 %v2447_v42  ;;  %2418 = vmatprep.subr.bf16.mxu0 %v2417_v43 }
  0x45   : > { %2450 = vmatprep.subr.bf16.mxu1 %v2449_v48 }
  0x47   : > { %2420 = vmatpush1.bf16.msra.mxu0 %v2419_v53 }
  0x48   : > { %2452 = vmatpush1.bf16.msra.mxu1 %v2451_v54  ;;  %2422 = vmatprep.subr.bf16.mxu0 %v2421_v55 }
  0x49   : > { %2454 = vmatprep.subr.bf16.mxu1 %v2453_v59 }
  0x4b   : > { %2424 = vmatpush1.bf16.msra.mxu0 %v2423_v4 }
  0x4c   : > { %2456 = vmatpush1.bf16.msra.mxu1 %v2455_v5  ;;  %2426 = vmatprep.subr.bf16.mxu0 %v2425_v9 }
  0x4d   : > { %2458 = vmatprep.subr.bf16.mxu1 %v2457_v14 }
  0x4f   : > { %2428 = vmatpush1.bf16.msra.mxu0 %v2427_v17 }
  0x50   : > { %2460 = vmatpush1.bf16.msra.mxu1 %v2459_v18  ;;  %2183 = vmatprep.subr.mxu0 %v2617_v47 }
  0x51   : > { %2188 = vmatprep.subr.mxu1 %v2617_v47 }
  0x52   : > { %482 = vmatmul.mubr.f32.vlgmr.msra.gmra.mrb[0].mxu0 %v146_v21 }
  0x53   : > { %553 = vmatmul.mubr.f32.vlgmr.msra.gmra.mrb[0].mxu1 %v146_v21  ;;  %2185 = vmatprep.mubr.msk.f32.mxu0 %vm2618_vm0, %v2617_v47 }
  0x54   : > { %2190 = vmatprep.mubr.msk.f32.mxu1 %vm2618_vm0, %v2617_v47 }
  0x58   : > { %2184 = vmatpush3.xpose.msra.mxu0 %v2683_v1 }
  0x59   : > { %2189 = vmatpush3.xpose.msra.mxu1 %v2688_v2  ;;  %2193 = vmatprep.subr.mxu0 %v2617_v47 }
  0x5a   : > { %2198 = vmatprep.subr.mxu1 %v2617_v47 }
 0x125   : > { %v483_v27 = vpop.f32.mrb[0].mxu0 }
 0x126   : > { %v559_v28 = vadd.f32 %v483_v27, %v2739_v24  ;;  %v554_v30 = vpop.f32.mrb[0].mxu1  ;;  %v485_v31 = vpop.f32.mrb[1].mxu0 }
 0x127   : > { %v560_v40 = vadd.f32 %v485_v31, %v2741_v25  ;;  %v556_v41 = vpop.f32.mrb[1].mxu1  ;;  %v561_v46 = vadd.f32 %v554_v30, %v2743_v26 }
 0x128   : > { %v2106_v42 = vmul.f32 -1.442695, %v559_v28  ;;  %v562_v44 = vadd.f32 %v556_v41, %v2747_v29 }
 0x129   : > { %v2107_v43 = vmul.f32 -1.442695, %v560_v40 }
 0x12a   : > { %2542 = vpow2.f32 %v2106_v42  ;;  %v2108_v45 = vmul.f32 -1.442695, %v562_v44 }
 0x12b   : > { %2544 = vpow2.f32 %v2107_v43 }
 0x12c   : > { %2546 = vpow2.f32 %v2108_v45 }
 0x12d   : > { %2548 = vtanh.f32 %v561_v46 }
 0x134   : > { %v2543_v48 = vpop.eup %2542 }
 0x135   : > { %v2545_v49 = vpop.eup %2544  ;;  %v566_v50 = vadd.f32 1.0, %v2543_v48 }
 0x136   : > { %v572_v51 = vadd.f32 1.0, %v2545_v49  ;;  %v2547_v19 = vpop.eup %2546 }
 0x137   : > { %2550 = vrcp.f32 %v566_v50  ;;  %v2549_v52 = vpop.eup %2548  ;;  %v579_v56 = vadd.f32 1.0, %v2547_v19 }
 0x138   : > { %2552 = vrcp.f32 %v572_v51 }
 0x139   : > { %2554 = vrcp.f32 %v579_v56 }
 0x141   : > { %v2551_v53 = vpop.eup %2550 }
 0x142   : > { %v2553_v54 = vpop.eup %2552  ;;  %v583_v55 = vmul.f32 %v2551_v53, %v2549_v52 }
 0x143   : > { %v582_v57 = vmul.f32 %v2606_v23, %v2553_v54  ;;  %v2555_v58 = vpop.eup %2554 }
 0x145   : > { %v3195_v23 = vadd.f32 %v583_v55, %v582_v57  }
 0x147   : > { %2556 = vtanh.f32 %v3195_v23 }
 0x151   : > { %v2557_v59 = vpop.eup %2556 }
 0x152   : > { %v3198_v19 = vmul.f32 %v2557_v59, %v2555_v58  }
 0x154   : > { %v595_v60 = vrot.slane %v3198_v19, %v2729_v20  ;;  %v588_v61 = vcombine.high %v3198_v19, %v3198_v19 }
 0x156   : > { %v611_v62 = vrot.slane %v595_v60, %v2729_v20  ;;  %v603_v63 = vcombine.high %v595_v60, %v595_v60  ;;  %v602_v4 = vrot.slane %v588_v61, %v2729_v20 }
 0x158   : > { %2186 = vmatmul.mubr.f32.vlgmr.msra.gmra.mrb[2].mxu0 %v611_v62  ;;  %v625_v0 = vrot.slane %v603_v63, %v2729_v20  ;;  %v633_v5 = vcombine.high %v611_v62, %v611_v62  ;;  %v604_v12 = vcombine.high %v602_v4, %v602_v4  ;;  %v618_v13 = vrot.slane %v602_v4, %v2729_v20 }
 0x159   : > { %2194 = vmatpush3.xpose.msra.mxu0 %v2693_v3  ;;  %2195 = vmatprep.mubr.msk.f32.mxu0 %vm2618_vm0, %v2617_v47 }
 0x15a   : > { %2191 = vmatmul.mubr.f32.vlgmr.msra.gmra.mrb[2].mxu1 %v625_v0  ;;  %2203 = vmatprep.subr.mxu0 %v2617_v47  ;;  %v635_v9 = vcombine.high %v625_v0, %v625_v0  ;;  %v632_v14 = vrot.slane %v604_v12, %v2729_v20  ;;  %v634_v15 = vcombine.high %v618_v13, %v618_v13 }
 0x15b   : > { %2199 = vmatpush3.xpose.msra.mxu1 %v2698_v6  ;;  %2200 = vmatprep.mubr.msk.f32.mxu1 %vm2618_vm0, %v2617_v47 }
 0x15c   : > { %2196 = vmatmul.mubr.f32.vlgmr.msra.gmra.mrb[4].mxu0 %v633_v5  ;;  %2208 = vmatprep.subr.mxu1 %v2617_v47  ;;  %v636_v16 = vcombine.high %v632_v14, %v632_v14 }
 0x15d   : > { %2204 = vmatpush3.xpose.msra.mxu0 %v2703_v7  ;;  %2205 = vmatprep.mubr.msk.f32.mxu0 %vm2618_vm0, %v2617_v47 }
 0x15e   : > { %2201 = vmatmul.mubr.f32.vlgmr.msra.gmra.mrb[4].mxu1 %v635_v9  ;;  %2213 = vmatprep.subr.mxu0 %v2617_v47 }
 0x15f   : > { %2209 = vmatpush3.xpose.msra.mxu1 %v2708_v8  ;;  %2210 = vmatprep.mubr.msk.f32.mxu1 %vm2618_vm0, %v2617_v47 }
 0x160   : > { %2206 = vmatmul.mubr.f32.vlgmr.msra.gmra.mrb[6].mxu0 %v618_v13  ;;  %2218 = vmatprep.subr.mxu1 %v2617_v47 }
 0x161   : > { %2214 = vmatpush3.xpose.msra.mxu0 %v2713_v10  ;;  %2215 = vmatprep.mubr.msk.f32.mxu0 %vm2618_vm0, %v2617_v47 }
 0x162   : > { %2211 = vmatmul.mubr.f32.vlgmr.msra.gmra.mrb[6].mxu1 %v632_v14  ;;  %2223 = vmatprep.subr.mxu0 %v2617_v47 }
 0x163   : > { %2219 = vmatpush3.xpose.msra.mxu1 %v2718_v11  ;;  %2220 = vmatprep.mubr.msk.f32.mxu1 %vm2618_vm0, %v2617_v47 }
 0x164   : > { %2216 = vmatmul.mubr.f32.vlgmr.msra.gmra.mrb[8].mxu0 %v634_v15  ;;  %2228 = vmatprep.subr.mxu1 %v2617_v47 }
 0x165   : > { %2224 = vmatpush3.msra.mxu0 %v2683_v1  ;;  %2225 = vmatprep.mubr.msk.f32.mxu0 %vm2618_vm0, %v2617_v47 }
 0x166   : > { %2221 = vmatmul.mubr.f32.vlgmr.msra.gmra.mrb[8].mxu1 %v636_v16  ;;  %2233 = vmatprep.subr.mxu0 %v2617_v47 }
 0x167   : > { %2229 = vmatpush3.msra.mxu1 %v2688_v2  ;;  %2230 = vmatprep.mubr.msk.f32.mxu1 %vm2618_vm0, %v2617_v47 }
 0x168   : > { %2238 = vmatprep.subr.mxu1 %v2617_v47 }
 0x22b   : > { %v711_v17 = vpop.f32.mrb[2].mxu0 }
 0x22c   : > { %v712_v18 = vadd.f32 %v711_v17, %v2750_v32  ;;  %v2187_v21 = vpop.f32.mrb[3].mxu0 }
 0x22d   : > { %v781_v27 = vpop.f32.mrb[2].mxu1 }
 0x22e   : > { %v782_v28 = vadd.f32 %v781_v27, %v2756_v34  ;;  %v2192_v30 = vpop.f32.mrb[3].mxu1  ;;  %v1206_v31 = vsel %vm1205_vm1, %v712_v18, -inf }
 0x22f   : > { %1207 = vmax.xlane.f32.xlu0 %v1206_v31  ;;  %v851_v40 = vpop.f32.mrb[4].mxu0 }
 0x230   : > { %v852_v41 = vadd.f32 %v851_v40, %v93_v36  ;;  %v2197_v42 = vpop.f32.mrb[5].mxu0  ;;  %v1209_v48 = vsel %vm1205_vm1, %v782_v28, -inf }
 0x231   : > { %v921_v43 = vpop.f32.mrb[4].mxu1 }
 0x232   : > { %v922_v44 = vadd.f32 %v921_v43, %v95_v38  ;;  %v2202_v45 = vpop.f32.mrb[5].mxu1  ;;  %v1212_v46 = vsel %vm1205_vm1, %v852_v41, -inf }
 0x233   : > { %1213 = vmax.xlane.f32.xlu1 %v1212_v46  ;;  %1210 = vmax.xlane.f32.xlu0 %v1209_v48  ;;  %v991_v49 = vpop.f32.mrb[6].mxu0 }
 0x234   : > { %v992_v50 = vadd.f32 %v991_v49, %v2753_v33  ;;  %v2207_v51 = vpop.f32.mrb[7].mxu0  ;;  %v1215_v55 = vsel %vm1205_vm1, %v922_v44, -inf }
 0x235   : > { %v1061_v52 = vpop.f32.mrb[6].mxu1 }
 0x236   : > { %v1062_v53 = vadd.f32 %v1061_v52, %v2759_v35  ;;  %v2212_v54 = vpop.f32.mrb[7].mxu1  ;;  %v1218_v56 = vsel %vm1205_vm1, %v992_v50, -inf }
 0x237   : > { %1216 = vmax.xlane.f32.xlu1 %v1215_v55  ;;  %1219 = vmax.xlane.f32.xlu0 %v1218_v56  ;;  %v1131_v57 = vpop.f32.mrb[8].mxu0 }
 0x238   : > { %v1132_v58 = vadd.f32 %v1131_v57, %v94_v37  ;;  %v2217_v59 = vpop.f32.mrb[9].mxu0  ;;  %v1221_v0 = vsel %vm1205_vm1, %v1062_v53, -inf }
 0x239   : > { %v1201_v60 = vpop.f32.mrb[8].mxu1 }
 0x23a   : > { %v1202_v61 = vadd.f32 %v1201_v60, %v96_v39  ;;  %v2222_v62 = vpop.f32.mrb[9].mxu1  ;;  %v1224_v63 = vsel %vm1205_vm1, %v1132_v58, -inf }
 0x23b   : > { %1225 = vmax.xlane.f32.xlu0 %v1224_v63  ;;  %1222 = vmax.xlane.f32.xlu1 %v1221_v0 }
 0x23c   : > { %v1227_v4 = vsel %vm1205_vm1, %v1202_v61, -inf }
 0x23f   : > { %1228 = vmax.xlane.f32.xlu1 %v1227_v4 }
 0x2bc   : > { %v1208_v5 = vpop.xlane.xlu0 %1207 }
 0x2bd   : > { %v1230_v9 = vsub.f32 %v712_v18, %v1208_v5 }
 0x2bf   : > { %v1238_v12 = vmul.f32 1.442695, %v1230_v9 }
 0x2c0   : > { %v1214_v13 = vpop.xlane.xlu1 %1213  ;;  %v1211_v14 = vpop.xlane.xlu0 %1210 }
 0x2c1   : > { %2558 = vpow2.f32 %v1238_v12  ;;  %v1232_v15 = vsub.f32 %v852_v41, %v1214_v13  ;;  %v1231_v16 = vsub.f32 %v782_v28, %v1211_v14 }
 0x2c3   : > { %v1242_v17 = vmul.f32 1.442695, %v1232_v15  ;;  %v1240_v21 = vmul.f32 1.442695, %v1231_v16 }
 0x2c4   : > { %v1217_v27 = vpop.xlane.xlu1 %1216  ;;  %v1220_v30 = vpop.xlane.xlu0 %1219 }
 0x2c5   : > { %2560 = vpow2.f32 %v1242_v17  ;;  %v1233_v31 = vsub.f32 %v922_v44, %v1217_v27  ;;  %v1234_v40 = vsub.f32 %v992_v50, %v1220_v30 }
 0x2c6   : > { %2562 = vpow2.f32 %v1240_v21 }
 0x2c7   : > { %v1244_v42 = vmul.f32 1.442695, %v1233_v31  ;;  %v1246_v43 = vmul.f32 1.442695, %v1234_v40 }
 0x2c8   : > { %v1226_v45 = vpop.xlane.xlu0 %1225  ;;  %v1223_v46 = vpop.xlane.xlu1 %1222 }
 0x2c9   : > { %2564 = vpow2.f32 %v1244_v42  ;;  %v1236_v18 = vsub.f32 %v1132_v58, %v1226_v45  ;;  %v1235_v48 = vsub.f32 %v1062_v53, %v1223_v46 }
 0x2ca   : > { %2566 = vpow2.f32 %v1246_v43 }
 0x2cb   : > { %v2559_v49 = vpop.eup %2558  ;;  %v1250_v51 = vmul.f32 1.442695, %v1236_v18  ;;  %v1248_v41 = vmul.f32 1.442695, %v1235_v48  ;;  %v1895_v48 = vld [vmem:[%s3445_s9] sm:$0xff] }
 0x2cc   : > { %v1229_v28 = vpop.xlane.xlu1 %1228  ;;  %v1254_v52 = vsel %vm1205_vm1, %v2559_v49, 0.0 }
 0x2cd   : > { %2568 = vpow2.f32 %v1250_v51  ;;  %v1237_v54 = vsub.f32 %v1202_v61, %v1229_v28  ;;  %1255 = vadd.xlane.f32.xlu0 %v1254_v52 }
 0x2ce   : > { %2570 = vpow2.f32 %v1248_v41 }
 0x2cf   : > { %v2561_v44 = vpop.eup %2560  ;;  %v1252_v50 = vmul.f32 1.442695, %v1237_v54 }
 0x2d0   : > { %v2563_v55 = vpop.eup %2562  ;;  %v1260_v56 = vsel %vm1205_vm1, %v2561_v44, 0.0 }
 0x2d1   : > { %2572 = vpow2.f32 %v1252_v50  ;;  %1261 = vadd.xlane.f32.xlu0 %v1260_v56  ;;  %v1257_v53 = vsel %vm1205_vm1, %v2563_v55, 0.0  ;;  %v1898_v50 = vld [vmem:[%s3445_s9 + $0x18] sm:$0xff]  ;;  %v1879_v56 = vld [vmem:[%s3444_s8] sm:$0xff] }
 0x2d2   : > { %1258 = vadd.xlane.f32.xlu1 %v1257_v53  ;;  %v1880_v53 = vld [vmem:[%s3444_s8 + $0x8] sm:$0xff] }
 0x2d3   : > { %v2565_v57 = vpop.eup %2564 }
 0x2d4   : > { %v2567_v58 = vpop.eup %2566  ;;  %v1263_v59 = vsel %vm1205_vm1, %v2565_v57, 0.0 }
 0x2d5   : > { %v1266_v60 = vsel %vm1205_vm1, %v2567_v58, 0.0 }
 0x2d6   : > { %1267 = vadd.xlane.f32.xlu0 %v1266_v60  ;;  %1264 = vadd.xlane.f32.xlu1 %v1263_v59 }
 0x2d7   : > { %v2569_v61 = vpop.eup %2568 }
 0x2d8   : > { %v2571_v62 = vpop.eup %2570  ;;  %v1272_v63 = vsel %vm1205_vm1, %v2569_v61, 0.0 }
 0x2d9   : > { %v1269_v0 = vsel %vm1205_vm1, %v2571_v62, 0.0 }
 0x2da   : > { %1273 = vadd.xlane.f32.xlu0 %v1272_v63  ;;  %1270 = vadd.xlane.f32.xlu1 %v1269_v0  ;;  %v2486_v63 = vpack.c.bf16 %v1880_v53, %v1879_v56  ;;  %v1881_v0 = vld [vmem:[%s3444_s8 + $0x10] sm:$0xff]  ;;  %v1891_v56 = vld [vmem:[%s3444_s8 + $0x60] sm:$0xff]  ;;  %v1892_v53 = vld [vmem:[%s3444_s8 + $0x68] sm:$0xff] }
 0x2db   : > { %v3272_v4 = vpop.eup %2572 }
 0x2dc   : > { %v1275_v5 = vsel %vm1205_vm1, %v3272_v4, 0.0 }
 0x2de   : > { %1276 = vadd.xlane.f32.xlu1 %v1275_v5 }
 0x35a   : > { %v1256_v9 = vpop.xlane.xlu0 %1255 }
 0x35b   : > { %2574 = vrcp.f32 %v1256_v9  ;;  %v1901_v9 = vld [vmem:[%s3445_s9 + $0x30] sm:$0xff] }
 0x35e   : > { %v1262_v12 = vpop.xlane.xlu0 %1261 }
 0x35f   : > { %2576 = vrcp.f32 %v1262_v12  ;;  %v1259_v13 = vpop.xlane.xlu1 %1258  ;;  %v1902_v12 = vld [vmem:[%s3445_s9 + $0x38] sm:$0xff] }
 0x360   : > { %2578 = vrcp.f32 %v1259_v13 }
 0x363   : > { %v1268_v14 = vpop.xlane.xlu0 %1267  ;;  %v1265_v15 = vpop.xlane.xlu1 %1264 }
 0x364   : > { %2580 = vrcp.f32 %v1268_v14  ;;  %v1883_v14 = vld [vmem:[%s3444_s8 + $0x20] sm:$0xff] }
 0x365   : > { %v2575_v16 = vpop.eup %2574  ;;  %2582 = vrcp.f32 %v1265_v15  ;;  %v1884_v15 = vld [vmem:[%s3444_s8 + $0x28] sm:$0xff] }
 0x366   : > { %v1286_v17 = vmul.f32 %v2575_v16, %v2559_v49  ;;  %v1896_v49 = vld [vmem:[%s3445_s9 + $0x8] sm:$0xff]  ;;  %v2471_v16 = vpack.c.bf16 %v1902_v12, %v1901_v9 }
 0x367   : > { %v1274_v21 = vpop.xlane.xlu0 %1273  ;;  %v1271_v27 = vpop.xlane.xlu1 %1270  ;;  %v2462_v28 = vpack.c.bf16 %v1896_v49, %v1895_v48  ;;  %v1885_v49 = vld [vmem:[%s3444_s8 + $0x30] sm:$0xff] }
 0x368   : > { %2584 = vrcp.f32 %v1274_v21  ;;  %2226 = vmatmul.mubr.msk.f32.vlgmr.msra.gmra.mrb[10].mxu0 %vm1294_vm2, %v1286_v17  ;;  %v1903_v17 = vld [vmem:[%s3445_s9 + $0x40] sm:$0xff]  ;;  %v1904_v21 = vld [vmem:[%s3445_s9 + $0x48] sm:$0xff] }
 0x369   : > { %v2577_v30 = vpop.eup %2576  ;;  %2586 = vrcp.f32 %v1271_v27  ;;  %2234 = vmatpush3.msra.mxu0 %v2693_v3  ;;  %2235 = vmatprep.mubr.msk.f32.mxu0 %vm2618_vm0, %v2617_v47  ;;  %v2492_v27 = vpack.c.bf16 %v1884_v15, %v1883_v14 }
 0x36a   : > { %v2579_v31 = vpop.eup %2578  ;;  %v1288_v40 = vmul.f32 %v2577_v30, %v2561_v44  ;;  %2243 = vmatprep.subr.mxu0 %v2617_v47  ;;  %v1897_v44 = vld [vmem:[%s3445_s9 + $0x10] sm:$0xff]  ;;  %v2474_v30 = vpack.c.bf16 %v1904_v21, %v1903_v17 }
 0x36b   : > { %v1287_v42 = vmul.f32 %v2579_v31, %v2563_v55  ;;  %v1277_v43 = vpop.xlane.xlu1 %1276  ;;  %v2465_v59 = vpack.c.bf16 %v1898_v50, %v1897_v44  ;;  %v1906_v31 = vld [vmem:[%s3445_s9 + $0x58] sm:$0xff]  ;;  %v1889_v44 = vld [vmem:[%s3444_s8 + $0x50] sm:$0xff] }
 0x36c   : > { %2588 = vrcp.f32 %v1277_v43  ;;  %2236 = vmatmul.mubr.msk.f32.vlgmr.msra.gmra.mrb[12].mxu0 %vm1294_vm2, %v1288_v40  ;;  %v1908_v43 = vld [vmem:[%s3445_s9 + $0x68] sm:$0xff]  ;;  %v1890_v50 = vld [vmem:[%s3444_s8 + $0x58] sm:$0xff] }
 0x36d   : > { %2231 = vmatmul.mubr.msk.f32.vlgmr.msra.gmra.mrb[10].mxu1 %vm1294_vm2, %v1287_v42  ;;  %2244 = vmatpush3.msra.mxu0 %v2703_v7  ;;  %v1907_v42 = vld [vmem:[%s3445_s9 + $0x60] sm:$0xff] }
 0x36e   : > { %v2581_v45 = vpop.eup %2580  ;;  %2239 = vmatpush3.msra.mxu1 %v2698_v6  ;;  %2240 = vmatprep.mubr.msk.f32.mxu1 %vm2618_vm0, %v2617_v47 }
 0x36f   : > { %v2583_v46 = vpop.eup %2582  ;;  %v1290_v18 = vmul.f32 %v2581_v45, %v2567_v58  ;;  %2245 = vmatprep.mubr.msk.f32.mxu0 %vm2618_vm0, %v2617_v47  ;;  %2248 = vmatprep.subr.mxu1 %v2617_v47  ;;  %v2480_v45 = vpack.c.bf16 %v1908_v43, %v1907_v42 }
 0x370   : > { %v1289_v51 = vmul.f32 %v2583_v46, %v2565_v57  ;;  %2253 = vmatprep.subr.mxu0 %v2617_v47  ;;  %v2619_v57 = vmov 0.0|0.0   ;;  %v1909_v46 = vld [vmem:[%s3445_s9 + $0x70] sm:$0xff] }
 0x371   : > { %2246 = vmatmul.mubr.msk.f32.vlgmr.msra.gmra.mrb[14].mxu0 %vm1294_vm2, %v1290_v18  ;;  %v1910_v18 = vld [vmem:[%s3445_s9 + $0x78] sm:$0xff] }
 0x372   : > { %v2585_v41 = vpop.eup %2584  ;;  %2241 = vmatmul.mubr.msk.f32.vlgmr.msra.gmra.mrb[12].mxu1 %vm1294_vm2, %v1289_v51  ;;  %2254 = vmatpush3.msra.mxu0 %v2713_v10  ;;  %v2483_v48 = vpack.c.bf16 %v1910_v18, %v1909_v46  ;;  %v1886_v51 = vld [vmem:[%s3444_s8 + $0x38] sm:$0xff] }
 0x373   : > { %v2587_v52 = vpop.eup %2586  ;;  %v1292_v54 = vmul.f32 %v2585_v41, %v2569_v61  ;;  %2249 = vmatpush3.msra.mxu1 %v2708_v8  ;;  %2250 = vmatprep.mubr.msk.f32.mxu1 %vm2618_vm0, %v2617_v47  ;;  %v1899_v61 = vld [vmem:[%s3445_s9 + $0x20] sm:$0xff]  ;;  %v2495_v41 = vpack.c.bf16 %v1886_v51, %v1885_v49 }
 0x374   : > { %v1291_v55 = vmul.f32 %v2587_v52, %v2571_v62  ;;  %2255 = vmatprep.mubr.msk.f32.mxu0 %vm2618_vm0, %v2617_v47  ;;  %2258 = vmatprep.subr.mxu1 %v2617_v47  ;;  %v1900_v62 = vld [vmem:[%s3445_s9 + $0x28] sm:$0xff] }
 0x375   : > { %2461 = vmatprep.subr.bf16.mxu0 %v2619_v57  ;;  %2256 = vmatmul.mubr.msk.f32.vlgmr.msra.gmra.mrb[16].mxu0 %vm1294_vm2, %v1292_v54  ;;  %v2468_v5 = vpack.c.bf16 %v1900_v62, %v1899_v61  ;;  %v1888_v52 = vld [vmem:[%s3444_s8 + $0x48] sm:$0xff] }
 0x376   : > { %v2589_v58 = vpop.eup %2588  ;;  %2251 = vmatmul.mubr.msk.f32.vlgmr.msra.gmra.mrb[14].mxu1 %vm1294_vm2, %v1291_v55  ;;  %2463 = vmatpush3.bf16.msra.mxu0 %v2462_v28  ;;  %v1887_v28 = vld [vmem:[%s3444_s8 + $0x40] sm:$0xff]  ;;  %v2501_v55 = vpack.c.bf16 %v1890_v50, %v1889_v44 }
 0x377   : > { %v1293_v60 = vmul.f32 %v2589_v58, %v3272_v4  ;;  %2259 = vmatpush3.msra.mxu1 %v2718_v11  ;;  %2260 = vmatprep.mubr.msk.f32.mxu1 %vm2618_vm0, %v2617_v47  ;;  %v1882_v4 = vld [vmem:[%s3444_s8 + $0x18] sm:$0xff]  ;;  %v2498_v54 = vpack.c.bf16 %v1888_v52, %v1887_v28  ;;  %v2504_v58 = vpack.c.bf16 %v1892_v53, %v1891_v56 }
 0x378   : > { %2464 = vmatprep.subr.bf16.mxu0 %v2619_v57  ;;  %2295 = vmatprep.mubr.msk.f32.mxu0 %vm2618_vm0, %v2617_v47  ;;  %v2489_v13 = vpack.c.bf16 %v1882_v4, %v1881_v0 }
 0x379   : > { %2485 = vmatprep.subr.bf16.mxu1 %v2619_v57 }
 0x37a   : > { %2261 = vmatmul.mubr.msk.f32.vlgmr.msra.gmra.mrb[16].mxu1 %vm1294_vm2, %v1293_v60  ;;  %2466 = vmatpush3.bf16.msra.mxu0 %v2465_v59  ;;  %v1893_v59 = vld [vmem:[%s3444_s8 + $0x70] sm:$0xff]  ;;  %v1894_v60 = vld [vmem:[%s3444_s8 + $0x78] sm:$0xff] }
 0x37b   : > { %2467 = vmatprep.subr.bf16.mxu0 %v2619_v57  ;;  %2487 = vmatpush3.bf16.msra.mxu1 %v2486_v63  ;;  %v2507_v61 = vpack.c.bf16 %v1894_v60, %v1893_v59 }
 0x37c   : > { %2488 = vmatprep.subr.bf16.mxu1 %v2619_v57  ;;  %2330 = vmatprep.mubr.msk.f32.mxu1 %vm2618_vm0, %v2617_v47  ;;  %v1905_v47 = vld [vmem:[%s3445_s9 + $0x50] sm:$0xff] }
 0x37d   : > { %v2477_v40 = vpack.c.bf16 %v1906_v31, %v1905_v47 }
 0x37e   : > { %2469 = vmatpush3.bf16.msra.mxu0 %v2468_v5 }
 0x37f   : > { %2470 = vmatprep.subr.bf16.mxu0 %v2619_v57  ;;  %2490 = vmatpush3.bf16.msra.mxu1 %v2489_v13 }
 0x380   : > { %2491 = vmatprep.subr.bf16.mxu1 %v2619_v57 }
 0x382   : > { %2472 = vmatpush3.bf16.msra.mxu0 %v2471_v16 }
 0x383   : > { %2473 = vmatprep.subr.bf16.mxu0 %v2619_v57  ;;  %2493 = vmatpush3.bf16.msra.mxu1 %v2492_v27 }
 0x384   : > { %2494 = vmatprep.subr.bf16.mxu1 %v2619_v57 }
 0x386   : > { %2475 = vmatpush3.bf16.msra.mxu0 %v2474_v30 }
 0x387   : > { %2476 = vmatprep.subr.bf16.mxu0 %v2619_v57  ;;  %2496 = vmatpush3.bf16.msra.mxu1 %v2495_v41 }
 0x388   : > { %2497 = vmatprep.subr.bf16.mxu1 %v2619_v57 }
 0x38a   : > { %2478 = vmatpush3.bf16.msra.mxu0 %v2477_v40 }
 0x38b   : > { %2479 = vmatprep.subr.bf16.mxu0 %v2619_v57  ;;  %2499 = vmatpush3.bf16.msra.mxu1 %v2498_v54 }
 0x38c   : > { %2500 = vmatprep.subr.bf16.mxu1 %v2619_v57 }
 0x38e   : > { %2481 = vmatpush3.bf16.msra.mxu0 %v2480_v45 }
 0x38f   : > { %2482 = vmatprep.subr.bf16.mxu0 %v2619_v57  ;;  %2502 = vmatpush3.bf16.msra.mxu1 %v2501_v55 }
 0x390   : > { %2503 = vmatprep.subr.bf16.mxu1 %v2619_v57 }
 0x392   : > { %2484 = vmatpush3.bf16.msra.mxu0 %v2483_v48 }
 0x393   : > { %2505 = vmatpush3.bf16.msra.mxu1 %v2504_v58 }
 0x394   : > { %2506 = vmatprep.subr.bf16.mxu1 %v2619_v57 }
 0x395   : > { %2296 = vmatmul.mubr.f32.vlgmr.msra.gmra.mrb[18].mxu0 %v3198_v19 }
 0x397   : > { %2508 = vmatpush3.bf16.msra.mxu1 %v2507_v61 }
 0x43b   : > { %v1364_v62 = vpop.f32.mrb[10].mxu0 }
 0x43c   : > { %v2227_v63 = vpop.f32.mrb[11].mxu0 }
 0x43f   : > { %v1510_v0 = vpop.f32.mrb[12].mxu0 }
 0x440   : > { %v1437_v4 = vpop.f32.mrb[10].mxu1  ;;  %v1992_v5 = vrot.slane %v1510_v0, 6  ;;  %v2237_v9 = vpop.f32.mrb[13].mxu0 }
 0x441   : > { %v1989_v12 = vrot.slane %v1437_v4, 7  ;;  %v2232_v57 = vpop.f32.mrb[11].mxu1 }
 0x443   : > { %v1991_v13 = vsel %vm1990_vm3, %v1989_v12, %v1364_v62 }
 0x444   : > { %v1994_v14 = vsel %vm1993_vm4, %v1992_v5, %v1991_v13  ;;  %v1656_v15 = vpop.f32.mrb[14].mxu0 }
 0x445   : > { %v1583_v16 = vpop.f32.mrb[12].mxu1  ;;  %v1998_v17 = vrot.slane %v1656_v15, 4  ;;  %v2247_v21 = vpop.f32.mrb[15].mxu0 }
 0x446   : > { %v1995_v27 = vrot.slane %v1583_v16, 5  ;;  %v2242_v30 = vpop.f32.mrb[13].mxu1 }
 0x448   : > { %v1997_v47 = vsel %vm1996_vm5, %v1995_v27, %v1994_v14  ;;  %v1802_v31 = vpop.f32.mrb[16].mxu0 }
 0x449   : > { %v2000_v40 = vsel %vm1999_vm6, %v1998_v17, %v1997_v47  ;;  %v1729_v42 = vpop.f32.mrb[14].mxu1  ;;  %v2004_v43 = vrot.slane %v1802_v31, 2  ;;  %v2257_v45 = vpop.f32.mrb[17].mxu0 }
 0x44a   : > { %v2001_v46 = vrot.slane %v1729_v42, 3  ;;  %v2252_v18 = vpop.f32.mrb[15].mxu1 }
 0x44c   : > { %v2003_v48 = vsel %vm2002_vm7, %v2001_v46, %v2000_v40 }
 0x44d   : > { %v2006_v49 = vsel %vm2005_vm8, %v2004_v43, %v2003_v48  ;;  %v1875_v51 = vpop.f32.mrb[16].mxu1 }
 0x44e   : > { %v2007_v41 = vrot.slane %v1875_v51, 1  ;;  %v2262_v28 = vpop.f32.mrb[17].mxu1 }
 0x450   : > { %v2009_v52 = vsel %vm2008_vm9, %v2007_v41, %v2006_v49 }
 0x451   : > { %2331 = vmatmul.mubr.f32.vlgmr.msra.gmra.mrb[18].mxu1 %v2009_v52 }
 0x468   : > { %v1977_v54 = vpop.f32.mrb[18].mxu0 }
 0x469   : > { %v2297_v44 = vpop.f32.mrb[19].mxu0 }
 0x524   : > { %v2077_v50 = vpop.f32.mrb[18].mxu1 }
 0x525   : > { %v2078_v55 = vadd.f32 %v2077_v50, %v1977_v54  ;;  %v2332_v56 = vpop.f32.mrb[19].mxu1 }
 0x527   : > { %v2081_v53 = vadd.f32 %v2734_v22, %v2078_v55 }
 0x529   : > { %2590 = vtanh.f32 %v2081_v53 }
 0x52e   :  { %140 = sbr.rel (!%p138_p0) target bundleno = 14 (0xe), region = 73 }
 0x533   : > { %v2591_v58 = vpop.eup %2590 }
 0x534   : > { %2084 = vst [vmem:[%s2083_s17] sm:$0xff] %v2591_v58 }

</bundles_post_ra>
